<compile_context>
chip_gen: v7x
topology: tpu7x:2x2x1
jax: 0.10.0
libtpu: 0.0.40
codegen_flags: <defaults>
</compile_context>

<pallas_src>
import functools

import jax
import jax.numpy as jnp
import numpy as np
from jax.experimental import pallas as pl
from jax.experimental.pallas import tpu as pltpu


# ----------------------------- Pallas kernel ------------------------------

def _mhsa_flash_kernel(x_q_ref, x_kv_ref, wq_ref, wk_ref, wv_ref, wp_ref,
                       b_ref, o_ref, q_scr, m_scr, l_scr, acc_scr, *,
                       num_heads):
    """One (batch, q-block) tile; grid axis 2 loops over kv blocks.

    x_q_ref : (1, tq, E)   bf16  query-side rows of this batch element
    x_kv_ref: (1, tkv, E)  bf16  key/value-side rows (current kv block)
    wq_ref  : (H, E, D)    bf16  per-head Q weights, 1/sqrt(D) pre-folded
    wk_ref  : (H, E, D)    bf16
    wv_ref  : (H, E, D)    bf16
    wp_ref  : (H, D, E)    bf16  output projection, reshaped per head
    b_ref   : (1, E)       f32   output projection bias
    o_ref   : (1, tq, E)   f32   projected output tile
    q_scr   : (H, tq, D)   bf16  per-head queries (computed once per q-block)
    m_scr   : (H, tq, 1)   f32   online-softmax running max
    l_scr   : (H, tq, 1)   f32   online-softmax running denominator
    acc_scr : (H, tq, D)   f32   online-softmax weighted-value accumulator
    """
    ki = pl.program_id(2)
    H = num_heads

    @pl.when(ki == 0)
    def _init():
        x_q = x_q_ref[0]                                     # (tq, E) bf16
        for h in range(H):                                   # leading-axis slice: free
            q_scr[h] = jnp.dot(
                x_q, wq_ref[h],
                preferred_element_type=jnp.float32).astype(jnp.bfloat16)
        m_scr[...] = jnp.full_like(m_scr, -jnp.inf)
        l_scr[...] = jnp.zeros_like(l_scr)
        acc_scr[...] = jnp.zeros_like(acc_scr)

    # Project K/V for this kv block: per-head 2-D matmuls on leading-axis
    # weight slices (no sub-128-lane extracts), then stack on the head axis.
    x_kv = x_kv_ref[0]                                       # (tkv, E) bf16
    k = jnp.stack(
        [jnp.dot(x_kv, wk_ref[h], preferred_element_type=jnp.float32)
         for h in range(H)], axis=0).astype(jnp.bfloat16)    # (H, tkv, D)
    v = jnp.stack(
        [jnp.dot(x_kv, wv_ref[h], preferred_element_type=jnp.float32)
         for h in range(H)], axis=0).astype(jnp.bfloat16)    # (H, tkv, D)

    # Head-batched scores (1/sqrt(D) already folded into Wq).
    q = q_scr[...]                                           # (H, tq, D) bf16
    s = jnp.einsum('htd,hsd->hts', q, k,
                   preferred_element_type=jnp.float32)       # (H, tq, tkv) f32
    # TODO(synk): optional attention-mask path (mask != None) would be applied
    # to `s` here, before the running max, to stay numerically stable.

    # Online softmax update (all elementwise math in f32; v5e has no bf16 VPU).
    m_prev = m_scr[...]
    m_new = jnp.maximum(m_prev, jnp.max(s, axis=-1, keepdims=True))
    alpha = jnp.exp(m_prev - m_new)
    p = jnp.exp(s - m_new)
    l_scr[...] = alpha * l_scr[...] + jnp.sum(p, axis=-1, keepdims=True)
    acc_scr[...] = alpha * acc_scr[...] + jnp.einsum(
        'hts,hsd->htd', p.astype(jnp.bfloat16), v,
        preferred_element_type=jnp.float32)                  # (H, tq, D) f32
    m_scr[...] = m_new
    # NOTE: attention-weight dropout and the output dropout of the PyTorch
    # module are identity in eval/inference mode -> no-ops here.

    @pl.when(ki == pl.num_programs(2) - 1)
    def _finalize():
        inv_l = pl.reciprocal(l_scr[...], approx=True)       # EUP, ~1e-3 rel err
        o_heads = acc_scr[...] * inv_l                        # (H, tq, D) f32
        tq = o_heads.shape[1]
        E = wp_ref.shape[2]
        # Output projection: sum_h o_h @ Wproj[h*D:(h+1)*D, :] == concat @ Wproj,
        # without materializing the lane-interleaved concat.
        y = jnp.zeros((tq, E), jnp.float32)
        for h in range(H):
            y = y + jnp.dot(o_heads[h].astype(jnp.bfloat16), wp_ref[h],
                            preferred_element_type=jnp.float32)
        o_ref[0] = (y + b_ref[...]).astype(o_ref.dtype)       # bias add in f32


# ------------------------------ Host wrapper -------------------------------

def _grid_invariant_spec(block_shape, index_map):
    """BlockSpec for blocks that never change across the grid (weights/bias).

    Single-buffer them (pipeline_mode=pl.Buffered(1)) so they don't get the
    default 2x double-buffering in VMEM; fall back to a plain BlockSpec if
    `pipeline_mode` is unavailable.
    """
    try:
        return pl.BlockSpec(block_shape, index_map,
                            pipeline_mode=pl.Buffered(1))
    except (TypeError, ValueError):
        return pl.BlockSpec(block_shape, index_map)


@functools.partial(jax.jit, static_argnames=("tq", "tkv"))
def multi_head_self_attention(x, wq, wk, wv, w_proj, b_proj, *, tq=None,
                              tkv=None):
    """Fused multi-head self-attention forward (eval mode, mask=None).

    x       : (B, T, E) float32
    wq/wk/wv: (H, E, D) per-head weights, pre-transposed so q_h = x @ wq[h]
    w_proj  : (E, E);  b_proj: (E,)
    """
    B, T, E = x.shape
    H, E_w, D = wq.shape
    assert E_w == E and H * D == E

    # Tile sizes: full T at toy sizes; capped at 128 for production T so the
    # working set (q + double-buffered x_kv + k/v/scores/acc) stays well
    # inside the 48 MiB budget below (v7x: 64 MiB/TC; v5e/v6e: 128 MiB).
    if tq is None:
        tq = min(T, 128)
    if tkv is None:
        tkv = min(T, 128)
    assert T % tq == 0 and T % tkv == 0
    grid = (B, T // tq, T // tkv)

    # bf16 MXU operands (f32 accumulation in-kernel); fold 1/sqrt(D) into Wq;
    # reshape Wproj per head so head slices are leading-axis. Bias stays f32.
    x_bf = x.astype(jnp.bfloat16)
    wq_bf = (wq * (float(D) ** -0.5)).astype(jnp.bfloat16)
    wk_bf = wk.astype(jnp.bfloat16)
    wv_bf = wv.astype(jnp.bfloat16)
    wp_bf = w_proj.reshape(H, D, E).astype(jnp.bfloat16)
    b2 = b_proj.reshape(1, E).astype(jnp.float32)

    kernel = functools.partial(_mhsa_flash_kernel, num_heads=H)
    return pl.pallas_call(
        kernel,
        out_shape=jax.ShapeDtypeStruct((B, T, E), jnp.float32),
        grid_spec=pltpu.PrefetchScalarGridSpec(
            num_scalar_prefetch=0,
            grid=grid,
            in_specs=[
                # x, query-side rows (constant over ki -> not re-copied).
                pl.BlockSpec((1, tq, E), lambda b, qi, ki: (b, qi, 0)),
                # x, key/value-side rows (streamed along the kv axis; raise to
                # pl.Buffered(3) here if the kv DMA stream is exposed).
                pl.BlockSpec((1, tkv, E), lambda b, qi, ki: (b, ki, 0)),
                _grid_invariant_spec((H, E, D), lambda b, qi, ki: (0, 0, 0)),
                _grid_invariant_spec((H, E, D), lambda b, qi, ki: (0, 0, 0)),
                _grid_invariant_spec((H, E, D), lambda b, qi, ki: (0, 0, 0)),
                _grid_invariant_spec((H, D, E), lambda b, qi, ki: (0, 0, 0)),
                _grid_invariant_spec((1, E), lambda b, qi, ki: (0, 0)),
            ],
            out_specs=pl.BlockSpec((1, tq, E), lambda b, qi, ki: (b, qi, 0)),
            scratch_shapes=[
                pltpu.VMEM((H, tq, D), jnp.bfloat16),   # q (per q-block)
                pltpu.VMEM((H, tq, 1), jnp.float32),    # m (running max)
                pltpu.VMEM((H, tq, 1), jnp.float32),    # l (running denom)
                pltpu.VMEM((H, tq, D), jnp.float32),    # acc
            ],
        ),
        compiler_params=pltpu.CompilerParams(
            # Batch and q-block axes parallel (keeps both v7x TCs busy even at
            # small/odd B; no-op on single-TC v5e/v6e); kv axis is the
            # online-softmax reduction.
            dimension_semantics=("parallel", "parallel", "arbitrary"),
            vmem_limit_bytes=48 * 1024 * 1024,
        ),
    )(x_bf, x_bf, wq_bf, wk_bf, wv_bf, wp_bf, b2)


# Pure-JAX reference (mirrors the PyTorch forward, eval mode, f32).
def _reference(x, wq, wk, wv, w_proj, b_proj):
    B, T, E = x.shape
    H, _, D = wq.shape
    outs = []
    for h in range(H):
        q = x @ wq[h]
        k = x @ wk[h]
        v = x @ wv[h]
        s = (q @ jnp.swapaxes(k, -2, -1)) * (D ** -0.5)
        p = jax.nn.softmax(s, axis=-1)
        outs.append(p @ v)
    concat = jnp.concatenate(outs, axis=-1)
    return concat @ w_proj + b_proj


# ---------------------------------- Main -----------------------------------

if __name__ == "__main__":
    num_heads = 4
    head_size = 8
    n_embds = num_heads * head_size   # 32
    B, T = 2, 8

    key = jax.random.PRNGKey(0)
    kx, kq, kk, kv_, kw, kb = jax.random.split(key, 6)

    # Deterministic init mirroring nn.Linear defaults; per-head weights stored
    # pre-transposed so the math is plain x @ W.
    lim = 1.0 / np.sqrt(n_embds)
    wq = jax.random.uniform(kq, (num_heads, n_embds, head_size), jnp.float32,
                            -lim, lim)
    wk = jax.random.uniform(kk, (num_heads, n_embds, head_size), jnp.float32,
                            -lim, lim)
    wv = jax.random.uniform(kv_, (num_heads, n_embds, head_size), jnp.float32,
                            -lim, lim)
    w_proj = jax.random.uniform(kw, (n_embds, n_embds), jnp.float32, -lim, lim)
    b_proj = jax.random.uniform(kb, (n_embds,), jnp.float32, -lim, lim)

    x = jax.random.normal(kx, (B, T, n_embds), jnp.float32)

    out = multi_head_self_attention(x, wq, wk, wv, w_proj, b_proj)
    out = jax.block_until_ready(out)

    ref = _reference(x, wq, wk, wv, w_proj, b_proj)
    # bf16 MXU operands + approx-reciprocal softmax denominator vs f32
    # reference -> ~1e-2-level absolute/relative differences.
    np.testing.assert_allclose(np.asarray(out), np.asarray(ref),
                               rtol=2e-2, atol=2e-2)

    print("KERNEL_OK")
</pallas_src>

<mosaic_0001>
module attributes {stable_mosaic.version = 11 : i64} {
  func.func @_mhsa_flash_kernel(%arg0: i32, %arg1: i32, %arg2: i32, %arg3: memref<1x8x32xbf16, #tpu.memory_space<vmem>>, %arg4: memref<1x8x32xbf16, #tpu.memory_space<vmem>>, %arg5: memref<4x32x8xbf16, #tpu.memory_space<vmem>>, %arg6: memref<4x32x8xbf16, #tpu.memory_space<vmem>>, %arg7: memref<4x32x8xbf16, #tpu.memory_space<vmem>>, %arg8: memref<4x8x32xbf16, #tpu.memory_space<vmem>>, %arg9: memref<1x32xf32, #tpu.memory_space<vmem>>, %arg10: memref<1x8x32xf32, #tpu.memory_space<vmem>>, %arg11: memref<4x8x8xbf16, #tpu.memory_space<vmem>>, %arg12: memref<4x8x1xf32, #tpu.memory_space<vmem>>, %arg13: memref<4x8x1xf32, #tpu.memory_space<vmem>>, %arg14: memref<4x8x8xf32, #tpu.memory_space<vmem>>) attributes {dimension_semantics = [#tpu.dimension_semantics<parallel>, #tpu.dimension_semantics<parallel>, #tpu.dimension_semantics<arbitrary>], iteration_bounds = array<i64: 2, 1, 1>, scalar_prefetch = 0 : i64, scratch_operands = 4 : i64, tpu.core_type = #tpu.core_type<tc>, window_params = [{transform_indices = @transform_0, window_bounds = array<i64: 1, 8, 32>}, {transform_indices = @transform_1, window_bounds = array<i64: 1, 8, 32>}, {pipeline_mode = #tpu.pipeline_mode<synchronous>, transform_indices = @transform_2, window_bounds = array<i64: 4, 32, 8>}, {pipeline_mode = #tpu.pipeline_mode<synchronous>, transform_indices = @transform_3, window_bounds = array<i64: 4, 32, 8>}, {pipeline_mode = #tpu.pipeline_mode<synchronous>, transform_indices = @transform_4, window_bounds = array<i64: 4, 32, 8>}, {pipeline_mode = #tpu.pipeline_mode<synchronous>, transform_indices = @transform_5, window_bounds = array<i64: 4, 8, 32>}, {pipeline_mode = #tpu.pipeline_mode<synchronous>, transform_indices = @transform_6, window_bounds = array<i64: 1, 32>}, {transform_indices = @transform_7, window_bounds = array<i64: 1, 8, 32>}]} {
    %c0_i32 = arith.constant 0 : i32
    %0 = arith.cmpi eq, %arg2, %c0_i32 : i32
    %1 = arith.extui %0 : i1 to i32
    %c0_i32_0 = arith.constant 0 : i32
    %2 = arith.cmpi ne, %1, %c0_i32_0 : i32
    scf.if %2 {
      %c0_58 = arith.constant 0 : index
      %c0_59 = arith.constant 0 : index
      %c0_60 = arith.constant 0 : index
      %69 = vector.load %arg3[%c0_58, %c0_59, %c0_60] : memref<1x8x32xbf16, #tpu.memory_space<vmem>>, vector<1x8x32xbf16>
      %70 = vector.shape_cast %69 : vector<1x8x32xbf16> to vector<8x32xbf16>
      %c0_61 = arith.constant 0 : index
      %c0_62 = arith.constant 0 : index
      %c0_63 = arith.constant 0 : index
      %71 = vector.load %arg5[%c0_61, %c0_62, %c0_63] : memref<4x32x8xbf16, #tpu.memory_space<vmem>>, vector<1x32x8xbf16>
      %72 = vector.shape_cast %71 : vector<1x32x8xbf16> to vector<32x8xbf16>
      %cst_64 = arith.constant dense<0.000000e+00> : vector<8x8xf32>
      %73 = tpu.matmul %70, %72, %cst_64 {dimension_numbers = #tpu.dot_dimension_numbers<[1], [0], [0], [1], [0, 0, 1, 1], [], []>} : vector<8x32xbf16>, vector<32x8xbf16>, vector<8x8xf32> -> vector<8x8xf32>
      %74 = arith.truncf %73 : vector<8x8xf32> to vector<8x8xbf16>
      %c0_65 = arith.constant 0 : index
      %c0_66 = arith.constant 0 : index
      %c0_67 = arith.constant 0 : index
      %75 = vector.load %arg11[%c0_65, %c0_66, %c0_67] : memref<4x8x8xbf16, #tpu.memory_space<vmem>>, vector<1x8x8xbf16>
      %76 = vector.shape_cast %75 : vector<1x8x8xbf16> to vector<8x8xbf16>
      %77 = vector.shape_cast %74 : vector<8x8xbf16> to vector<1x8x8xbf16>
      tpu.vector_store %arg11[%c0_65, %c0_66, %c0_67], %77 {strides = array<i32>} : memref<4x8x8xbf16, #tpu.memory_space<vmem>>, vector<1x8x8xbf16>,
      %c1_68 = arith.constant 1 : index
      %c0_69 = arith.constant 0 : index
      %c0_70 = arith.constant 0 : index
      %78 = vector.load %arg5[%c1_68, %c0_69, %c0_70] : memref<4x32x8xbf16, #tpu.memory_space<vmem>>, vector<1x32x8xbf16>
      %79 = vector.shape_cast %78 : vector<1x32x8xbf16> to vector<32x8xbf16>
      %cst_71 = arith.constant dense<0.000000e+00> : vector<8x8xf32>
      %80 = tpu.matmul %70, %79, %cst_71 {dimension_numbers = #tpu.dot_dimension_numbers<[1], [0], [0], [1], [0, 0, 1, 1], [], []>} : vector<8x32xbf16>, vector<32x8xbf16>, vector<8x8xf32> -> vector<8x8xf32>
      %81 = arith.truncf %80 : vector<8x8xf32> to vector<8x8xbf16>
      %c1_72 = arith.constant 1 : index
      %c0_73 = arith.constant 0 : index
      %c0_74 = arith.constant 0 : index
      %82 = vector.load %arg11[%c1_72, %c0_73, %c0_74] : memref<4x8x8xbf16, #tpu.memory_space<vmem>>, vector<1x8x8xbf16>
      %83 = vector.shape_cast %82 : vector<1x8x8xbf16> to vector<8x8xbf16>
      %84 = vector.shape_cast %81 : vector<8x8xbf16> to vector<1x8x8xbf16>
      tpu.vector_store %arg11[%c1_72, %c0_73, %c0_74], %84 {strides = array<i32>} : memref<4x8x8xbf16, #tpu.memory_space<vmem>>, vector<1x8x8xbf16>,
      %c2_75 = arith.constant 2 : index
      %c0_76 = arith.constant 0 : index
      %c0_77 = arith.constant 0 : index
      %85 = vector.load %arg5[%c2_75, %c0_76, %c0_77] : memref<4x32x8xbf16, #tpu.memory_space<vmem>>, vector<1x32x8xbf16>
      %86 = vector.shape_cast %85 : vector<1x32x8xbf16> to vector<32x8xbf16>
      %cst_78 = arith.constant dense<0.000000e+00> : vector<8x8xf32>
      %87 = tpu.matmul %70, %86, %cst_78 {dimension_numbers = #tpu.dot_dimension_numbers<[1], [0], [0], [1], [0, 0, 1, 1], [], []>} : vector<8x32xbf16>, vector<32x8xbf16>, vector<8x8xf32> -> vector<8x8xf32>
      %88 = arith.truncf %87 : vector<8x8xf32> to vector<8x8xbf16>
      %c2_79 = arith.constant 2 : index
      %c0_80 = arith.constant 0 : index
      %c0_81 = arith.constant 0 : index
      %89 = vector.load %arg11[%c2_79, %c0_80, %c0_81] : memref<4x8x8xbf16, #tpu.memory_space<vmem>>, vector<1x8x8xbf16>
      %90 = vector.shape_cast %89 : vector<1x8x8xbf16> to vector<8x8xbf16>
      %91 = vector.shape_cast %88 : vector<8x8xbf16> to vector<1x8x8xbf16>
      tpu.vector_store %arg11[%c2_79, %c0_80, %c0_81], %91 {strides = array<i32>} : memref<4x8x8xbf16, #tpu.memory_space<vmem>>, vector<1x8x8xbf16>,
      %c3_82 = arith.constant 3 : index
      %c0_83 = arith.constant 0 : index
      %c0_84 = arith.constant 0 : index
      %92 = vector.load %arg5[%c3_82, %c0_83, %c0_84] : memref<4x32x8xbf16, #tpu.memory_space<vmem>>, vector<1x32x8xbf16>
      %93 = vector.shape_cast %92 : vector<1x32x8xbf16> to vector<32x8xbf16>
      %cst_85 = arith.constant dense<0.000000e+00> : vector<8x8xf32>
      %94 = tpu.matmul %70, %93, %cst_85 {dimension_numbers = #tpu.dot_dimension_numbers<[1], [0], [0], [1], [0, 0, 1, 1], [], []>} : vector<8x32xbf16>, vector<32x8xbf16>, vector<8x8xf32> -> vector<8x8xf32>
      %95 = arith.truncf %94 : vector<8x8xf32> to vector<8x8xbf16>
      %c3_86 = arith.constant 3 : index
      %c0_87 = arith.constant 0 : index
      %c0_88 = arith.constant 0 : index
      %96 = vector.load %arg11[%c3_86, %c0_87, %c0_88] : memref<4x8x8xbf16, #tpu.memory_space<vmem>>, vector<1x8x8xbf16>
      %97 = vector.shape_cast %96 : vector<1x8x8xbf16> to vector<8x8xbf16>
      %98 = vector.shape_cast %95 : vector<8x8xbf16> to vector<1x8x8xbf16>
      tpu.vector_store %arg11[%c3_86, %c0_87, %c0_88], %98 {strides = array<i32>} : memref<4x8x8xbf16, #tpu.memory_space<vmem>>, vector<1x8x8xbf16>,
      %cst_89 = arith.constant 0xFF800000 : f32
      %99 = vector.broadcast %cst_89 : f32 to vector<4x8x1xf32>
      %c0_90 = arith.constant 0 : index
      %c0_91 = arith.constant 0 : index
      %c0_92 = arith.constant 0 : index
      %100 = vector.load %arg12[%c0_90, %c0_91, %c0_92] : memref<4x8x1xf32, #tpu.memory_space<vmem>>, vector<4x8x1xf32>
      tpu.vector_store %arg12[%c0_90, %c0_91, %c0_92], %99 {strides = array<i32>} : memref<4x8x1xf32, #tpu.memory_space<vmem>>, vector<4x8x1xf32>,
      %cst_93 = arith.constant 0.000000e+00 : f32
      %101 = vector.broadcast %cst_93 : f32 to vector<4x8x1xf32>
      %c0_94 = arith.constant 0 : index
      %c0_95 = arith.constant 0 : index
      %c0_96 = arith.constant 0 : index
      %102 = vector.load %arg13[%c0_94, %c0_95, %c0_96] : memref<4x8x1xf32, #tpu.memory_space<vmem>>, vector<4x8x1xf32>
      tpu.vector_store %arg13[%c0_94, %c0_95, %c0_96], %101 {strides = array<i32>} : memref<4x8x1xf32, #tpu.memory_space<vmem>>, vector<4x8x1xf32>,
      %cst_97 = arith.constant 0.000000e+00 : f32
      %103 = vector.broadcast %cst_97 : f32 to vector<4x8x8xf32>
      %c0_98 = arith.constant 0 : index
      %c0_99 = arith.constant 0 : index
      %c0_100 = arith.constant 0 : index
      %104 = vector.load %arg14[%c0_98, %c0_99, %c0_100] : memref<4x8x8xf32, #tpu.memory_space<vmem>>, vector<4x8x8xf32>
      tpu.vector_store %arg14[%c0_98, %c0_99, %c0_100], %103 {strides = array<i32>} : memref<4x8x8xf32, #tpu.memory_space<vmem>>, vector<4x8x8xf32>,
    } else {
    }
    %c0 = arith.constant 0 : index
    %c0_1 = arith.constant 0 : index
    %c0_2 = arith.constant 0 : index
    %3 = vector.load %arg4[%c0, %c0_1, %c0_2] : memref<1x8x32xbf16, #tpu.memory_space<vmem>>, vector<1x8x32xbf16>
    %4 = vector.shape_cast %3 : vector<1x8x32xbf16> to vector<8x32xbf16>
    %c0_3 = arith.constant 0 : index
    %c0_4 = arith.constant 0 : index
    %c0_5 = arith.constant 0 : index
    %5 = vector.load %arg6[%c0_3, %c0_4, %c0_5] : memref<4x32x8xbf16, #tpu.memory_space<vmem>>, vector<1x32x8xbf16>
    %6 = vector.shape_cast %5 : vector<1x32x8xbf16> to vector<32x8xbf16>
    %cst = arith.constant dense<0.000000e+00> : vector<8x8xf32>
    %7 = tpu.matmul %4, %6, %cst {dimension_numbers = #tpu.dot_dimension_numbers<[1], [0], [0], [1], [0, 0, 1, 1], [], []>} : vector<8x32xbf16>, vector<32x8xbf16>, vector<8x8xf32> -> vector<8x8xf32>
    %c1 = arith.constant 1 : index
    %c0_6 = arith.constant 0 : index
    %c0_7 = arith.constant 0 : index
    %8 = vector.load %arg6[%c1, %c0_6, %c0_7] : memref<4x32x8xbf16, #tpu.memory_space<vmem>>, vector<1x32x8xbf16>
    %9 = vector.shape_cast %8 : vector<1x32x8xbf16> to vector<32x8xbf16>
    %cst_8 = arith.constant dense<0.000000e+00> : vector<8x8xf32>
    %10 = tpu.matmul %4, %9, %cst_8 {dimension_numbers = #tpu.dot_dimension_numbers<[1], [0], [0], [1], [0, 0, 1, 1], [], []>} : vector<8x32xbf16>, vector<32x8xbf16>, vector<8x8xf32> -> vector<8x8xf32>
    %c2 = arith.constant 2 : index
    %c0_9 = arith.constant 0 : index
    %c0_10 = arith.constant 0 : index
    %11 = vector.load %arg6[%c2, %c0_9, %c0_10] : memref<4x32x8xbf16, #tpu.memory_space<vmem>>, vector<1x32x8xbf16>
    %12 = vector.shape_cast %11 : vector<1x32x8xbf16> to vector<32x8xbf16>
    %cst_11 = arith.constant dense<0.000000e+00> : vector<8x8xf32>
    %13 = tpu.matmul %4, %12, %cst_11 {dimension_numbers = #tpu.dot_dimension_numbers<[1], [0], [0], [1], [0, 0, 1, 1], [], []>} : vector<8x32xbf16>, vector<32x8xbf16>, vector<8x8xf32> -> vector<8x8xf32>
    %c3 = arith.constant 3 : index
    %c0_12 = arith.constant 0 : index
    %c0_13 = arith.constant 0 : index
    %14 = vector.load %arg6[%c3, %c0_12, %c0_13] : memref<4x32x8xbf16, #tpu.memory_space<vmem>>, vector<1x32x8xbf16>
    %15 = vector.shape_cast %14 : vector<1x32x8xbf16> to vector<32x8xbf16>
    %cst_14 = arith.constant dense<0.000000e+00> : vector<8x8xf32>
    %16 = tpu.matmul %4, %15, %cst_14 {dimension_numbers = #tpu.dot_dimension_numbers<[1], [0], [0], [1], [0, 0, 1, 1], [], []>} : vector<8x32xbf16>, vector<32x8xbf16>, vector<8x8xf32> -> vector<8x8xf32>
    %17 = vector.shape_cast %7 : vector<8x8xf32> to vector<1x8x8xf32>
    %18 = vector.shape_cast %10 : vector<8x8xf32> to vector<1x8x8xf32>
    %19 = vector.shape_cast %13 : vector<8x8xf32> to vector<1x8x8xf32>
    %20 = vector.shape_cast %16 : vector<8x8xf32> to vector<1x8x8xf32>
    %21 = tpu.concatenate %17, %18, %19, %20 in 0 : vector<1x8x8xf32>, vector<1x8x8xf32>, vector<1x8x8xf32>, vector<1x8x8xf32> -> vector<4x8x8xf32>
    %22 = arith.truncf %21 : vector<4x8x8xf32> to vector<4x8x8xbf16>
    %c0_15 = arith.constant 0 : index
    %c0_16 = arith.constant 0 : index
    %c0_17 = arith.constant 0 : index
    %23 = vector.load %arg7[%c0_15, %c0_16, %c0_17] : memref<4x32x8xbf16, #tpu.memory_space<vmem>>, vector<1x32x8xbf16>
    %24 = vector.shape_cast %23 : vector<1x32x8xbf16> to vector<32x8xbf16>
    %cst_18 = arith.constant dense<0.000000e+00> : vector<8x8xf32>
    %25 = tpu.matmul %4, %24, %cst_18 {dimension_numbers = #tpu.dot_dimension_numbers<[1], [0], [0], [1], [0, 0, 1, 1], [], []>} : vector<8x32xbf16>, vector<32x8xbf16>, vector<8x8xf32> -> vector<8x8xf32>
    %c1_19 = arith.constant 1 : index
    %c0_20 = arith.constant 0 : index
    %c0_21 = arith.constant 0 : index
    %26 = vector.load %arg7[%c1_19, %c0_20, %c0_21] : memref<4x32x8xbf16, #tpu.memory_space<vmem>>, vector<1x32x8xbf16>
    %27 = vector.shape_cast %26 : vector<1x32x8xbf16> to vector<32x8xbf16>
    %cst_22 = arith.constant dense<0.000000e+00> : vector<8x8xf32>
    %28 = tpu.matmul %4, %27, %cst_22 {dimension_numbers = #tpu.dot_dimension_numbers<[1], [0], [0], [1], [0, 0, 1, 1], [], []>} : vector<8x32xbf16>, vector<32x8xbf16>, vector<8x8xf32> -> vector<8x8xf32>
    %c2_23 = arith.constant 2 : index
    %c0_24 = arith.constant 0 : index
    %c0_25 = arith.constant 0 : index
    %29 = vector.load %arg7[%c2_23, %c0_24, %c0_25] : memref<4x32x8xbf16, #tpu.memory_space<vmem>>, vector<1x32x8xbf16>
    %30 = vector.shape_cast %29 : vector<1x32x8xbf16> to vector<32x8xbf16>
    %cst_26 = arith.constant dense<0.000000e+00> : vector<8x8xf32>
    %31 = tpu.matmul %4, %30, %cst_26 {dimension_numbers = #tpu.dot_dimension_numbers<[1], [0], [0], [1], [0, 0, 1, 1], [], []>} : vector<8x32xbf16>, vector<32x8xbf16>, vector<8x8xf32> -> vector<8x8xf32>
    %c3_27 = arith.constant 3 : index
    %c0_28 = arith.constant 0 : index
    %c0_29 = arith.constant 0 : index
    %32 = vector.load %arg7[%c3_27, %c0_28, %c0_29] : memref<4x32x8xbf16, #tpu.memory_space<vmem>>, vector<1x32x8xbf16>
    %33 = vector.shape_cast %32 : vector<1x32x8xbf16> to vector<32x8xbf16>
    %cst_30 = arith.constant dense<0.000000e+00> : vector<8x8xf32>
    %34 = tpu.matmul %4, %33, %cst_30 {dimension_numbers = #tpu.dot_dimension_numbers<[1], [0], [0], [1], [0, 0, 1, 1], [], []>} : vector<8x32xbf16>, vector<32x8xbf16>, vector<8x8xf32> -> vector<8x8xf32>
    %35 = vector.shape_cast %25 : vector<8x8xf32> to vector<1x8x8xf32>
    %36 = vector.shape_cast %28 : vector<8x8xf32> to vector<1x8x8xf32>
    %37 = vector.shape_cast %31 : vector<8x8xf32> to vector<1x8x8xf32>
    %38 = vector.shape_cast %34 : vector<8x8xf32> to vector<1x8x8xf32>
    %39 = tpu.concatenate %35, %36, %37, %38 in 0 : vector<1x8x8xf32>, vector<1x8x8xf32>, vector<1x8x8xf32>, vector<1x8x8xf32> -> vector<4x8x8xf32>
    %40 = arith.truncf %39 : vector<4x8x8xf32> to vector<4x8x8xbf16>
    %c0_31 = arith.constant 0 : index
    %c0_32 = arith.constant 0 : index
    %c0_33 = arith.constant 0 : index
    %41 = vector.load %arg11[%c0_31, %c0_32, %c0_33] : memref<4x8x8xbf16, #tpu.memory_space<vmem>>, vector<4x8x8xbf16>
    "tpu.trace_start"() <{level = 10 : i32, message = "htd,hsd->hts"}> : () -> ()
    %cst_34 = arith.constant dense<0.000000e+00> : vector<4x8x8xf32>
    %42 = tpu.matmul %41, %22, %cst_34 {dimension_numbers = #tpu.dot_dimension_numbers<[2], [2], [1], [1], [0, 0, 0, 1, 1, 1], [0], [0]>} : vector<4x8x8xbf16>, vector<4x8x8xbf16>, vector<4x8x8xf32> -> vector<4x8x8xf32>
    "tpu.trace_stop"() : () -> ()
    %c0_35 = arith.constant 0 : index
    %c0_36 = arith.constant 0 : index
    %c0_37 = arith.constant 0 : index
    %43 = vector.load %arg12[%c0_35, %c0_36, %c0_37] : memref<4x8x1xf32, #tpu.memory_space<vmem>>, vector<4x8x1xf32>
    %cst_38 = arith.constant dense<0xFF800000> : vector<4x8xf32>
    %44 = vector.multi_reduction <maximumf>, %42, %cst_38 [2] : vector<4x8x8xf32> to vector<4x8xf32>
    %45 = vector.shape_cast %44 : vector<4x8xf32> to vector<4x8x1xf32>
    %46 = arith.maximumf %43, %45 : vector<4x8x1xf32>
    %47 = arith.subf %43, %46 : vector<4x8x1xf32>
    %48 = math.exp %47 : vector<4x8x1xf32>
    %49 = vector.broadcast %46 : vector<4x8x1xf32> to vector<4x8x8xf32>
    %50 = arith.subf %42, %49 : vector<4x8x8xf32>
    %51 = math.exp %50 : vector<4x8x8xf32>
    %c0_39 = arith.constant 0 : index
    %c0_40 = arith.constant 0 : index
    %c0_41 = arith.constant 0 : index
    %52 = vector.load %arg13[%c0_39, %c0_40, %c0_41] : memref<4x8x1xf32, #tpu.memory_space<vmem>>, vector<4x8x1xf32>
    %53 = arith.mulf %48, %52 : vector<4x8x1xf32>
    %cst_42 = arith.constant dense<0.000000e+00> : vector<4x8xf32>
    %54 = vector.multi_reduction <add>, %51, %cst_42 [2] : vector<4x8x8xf32> to vector<4x8xf32>
    %55 = vector.shape_cast %54 : vector<4x8xf32> to vector<4x8x1xf32>
    %56 = arith.addf %53, %55 : vector<4x8x1xf32>
    %c0_43 = arith.constant 0 : index
    %c0_44 = arith.constant 0 : index
    %c0_45 = arith.constant 0 : index
    %57 = vector.load %arg13[%c0_43, %c0_44, %c0_45] : memref<4x8x1xf32, #tpu.memory_space<vmem>>, vector<4x8x1xf32>
    tpu.vector_store %arg13[%c0_43, %c0_44, %c0_45], %56 {strides = array<i32>} : memref<4x8x1xf32, #tpu.memory_space<vmem>>, vector<4x8x1xf32>,
    %c0_46 = arith.constant 0 : index
    %c0_47 = arith.constant 0 : index
    %c0_48 = arith.constant 0 : index
    %58 = vector.load %arg14[%c0_46, %c0_47, %c0_48] : memref<4x8x8xf32, #tpu.memory_space<vmem>>, vector<4x8x8xf32>
    %59 = vector.broadcast %48 : vector<4x8x1xf32> to vector<4x8x8xf32>
    %60 = arith.mulf %59, %58 : vector<4x8x8xf32>
    %61 = arith.truncf %51 : vector<4x8x8xf32> to vector<4x8x8xbf16>
    "tpu.trace_start"() <{level = 10 : i32, message = "hts,hsd->htd"}> : () -> ()
    %cst_49 = arith.constant dense<0.000000e+00> : vector<4x8x8xf32>
    %62 = tpu.matmul %61, %40, %cst_49 {dimension_numbers = #tpu.dot_dimension_numbers<[2], [1], [1], [2], [0, 0, 0, 1, 1, 2], [0], [0]>} : vector<4x8x8xbf16>, vector<4x8x8xbf16>, vector<4x8x8xf32> -> vector<4x8x8xf32>
    "tpu.trace_stop"() : () -> ()
    %63 = arith.addf %60, %62 : vector<4x8x8xf32>
    %c0_50 = arith.constant 0 : index
    %c0_51 = arith.constant 0 : index
    %c0_52 = arith.constant 0 : index
    %64 = vector.load %arg14[%c0_50, %c0_51, %c0_52] : memref<4x8x8xf32, #tpu.memory_space<vmem>>, vector<4x8x8xf32>
    tpu.vector_store %arg14[%c0_50, %c0_51, %c0_52], %63 {strides = array<i32>} : memref<4x8x8xf32, #tpu.memory_space<vmem>>, vector<4x8x8xf32>,
    %c0_53 = arith.constant 0 : index
    %c0_54 = arith.constant 0 : index
    %c0_55 = arith.constant 0 : index
    %65 = vector.load %arg12[%c0_53, %c0_54, %c0_55] : memref<4x8x1xf32, #tpu.memory_space<vmem>>, vector<4x8x1xf32>
    tpu.vector_store %arg12[%c0_53, %c0_54, %c0_55], %46 {strides = array<i32>} : memref<4x8x1xf32, #tpu.memory_space<vmem>>, vector<4x8x1xf32>,
    %c0_i32_56 = arith.constant 0 : i32
    %66 = arith.cmpi eq, %arg2, %c0_i32_56 : i32
    %67 = arith.extui %66 : i1 to i32
    %c0_i32_57 = arith.constant 0 : i32
    %68 = arith.cmpi ne, %67, %c0_i32_57 : i32
    scf.if %68 {
      %c0_58 = arith.constant 0 : index
      %c0_59 = arith.constant 0 : index
      %c0_60 = arith.constant 0 : index
      %69 = vector.load %arg13[%c0_58, %c0_59, %c0_60] : memref<4x8x1xf32, #tpu.memory_space<vmem>>, vector<4x8x1xf32>
      %70 = tpu.reciprocal %69 {approx = true} : vector<4x8x1xf32> -> vector<4x8x1xf32>
      %c0_61 = arith.constant 0 : index
      %c0_62 = arith.constant 0 : index
      %c0_63 = arith.constant 0 : index
      %71 = vector.load %arg14[%c0_61, %c0_62, %c0_63] : memref<4x8x8xf32, #tpu.memory_space<vmem>>, vector<4x8x8xf32>
      %72 = vector.broadcast %70 : vector<4x8x1xf32> to vector<4x8x8xf32>
      %73 = arith.mulf %71, %72 : vector<4x8x8xf32>
      %cst_64 = arith.constant 0.000000e+00 : f32
      %74 = vector.broadcast %cst_64 : f32 to vector<8x32xf32>
      %75 = vector.extract_strided_slice %73 {offsets = [0, 0, 0], sizes = [1, 8, 8], strides = [1, 1, 1]} : vector<4x8x8xf32> to vector<1x8x8xf32>
      %76 = vector.shape_cast %75 : vector<1x8x8xf32> to vector<8x8xf32>
      %77 = arith.truncf %76 : vector<8x8xf32> to vector<8x8xbf16>
      %c0_65 = arith.constant 0 : index
      %c0_66 = arith.constant 0 : index
      %c0_67 = arith.constant 0 : index
      %78 = vector.load %arg8[%c0_65, %c0_66, %c0_67] : memref<4x8x32xbf16, #tpu.memory_space<vmem>>, vector<1x8x32xbf16>
      %79 = vector.shape_cast %78 : vector<1x8x32xbf16> to vector<8x32xbf16>
      %cst_68 = arith.constant dense<0.000000e+00> : vector<8x32xf32>
      %80 = tpu.matmul %77, %79, %cst_68 {dimension_numbers = #tpu.dot_dimension_numbers<[1], [0], [0], [1], [0, 0, 1, 1], [], []>} : vector<8x8xbf16>, vector<8x32xbf16>, vector<8x32xf32> -> vector<8x32xf32>
      %81 = arith.addf %74, %80 : vector<8x32xf32>
      %82 = vector.extract_strided_slice %73 {offsets = [1, 0, 0], sizes = [1, 8, 8], strides = [1, 1, 1]} : vector<4x8x8xf32> to vector<1x8x8xf32>
      %83 = vector.shape_cast %82 : vector<1x8x8xf32> to vector<8x8xf32>
      %84 = arith.truncf %83 : vector<8x8xf32> to vector<8x8xbf16>
      %c1_69 = arith.constant 1 : index
      %c0_70 = arith.constant 0 : index
      %c0_71 = arith.constant 0 : index
      %85 = vector.load %arg8[%c1_69, %c0_70, %c0_71] : memref<4x8x32xbf16, #tpu.memory_space<vmem>>, vector<1x8x32xbf16>
      %86 = vector.shape_cast %85 : vector<1x8x32xbf16> to vector<8x32xbf16>
      %cst_72 = arith.constant dense<0.000000e+00> : vector<8x32xf32>
      %87 = tpu.matmul %84, %86, %cst_72 {dimension_numbers = #tpu.dot_dimension_numbers<[1], [0], [0], [1], [0, 0, 1, 1], [], []>} : vector<8x8xbf16>, vector<8x32xbf16>, vector<8x32xf32> -> vector<8x32xf32>
      %88 = arith.addf %81, %87 : vector<8x32xf32>
      %89 = vector.extract_strided_slice %73 {offsets = [2, 0, 0], sizes = [1, 8, 8], strides = [1, 1, 1]} : vector<4x8x8xf32> to vector<1x8x8xf32>
      %90 = vector.shape_cast %89 : vector<1x8x8xf32> to vector<8x8xf32>
      %91 = arith.truncf %90 : vector<8x8xf32> to vector<8x8xbf16>
      %c2_73 = arith.constant 2 : index
      %c0_74 = arith.constant 0 : index
      %c0_75 = arith.constant 0 : index
      %92 = vector.load %arg8[%c2_73, %c0_74, %c0_75] : memref<4x8x32xbf16, #tpu.memory_space<vmem>>, vector<1x8x32xbf16>
      %93 = vector.shape_cast %92 : vector<1x8x32xbf16> to vector<8x32xbf16>
      %cst_76 = arith.constant dense<0.000000e+00> : vector<8x32xf32>
      %94 = tpu.matmul %91, %93, %cst_76 {dimension_numbers = #tpu.dot_dimension_numbers<[1], [0], [0], [1], [0, 0, 1, 1], [], []>} : vector<8x8xbf16>, vector<8x32xbf16>, vector<8x32xf32> -> vector<8x32xf32>
      %95 = arith.addf %88, %94 : vector<8x32xf32>
      %96 = vector.extract_strided_slice %73 {offsets = [3, 0, 0], sizes = [1, 8, 8], strides = [1, 1, 1]} : vector<4x8x8xf32> to vector<1x8x8xf32>
      %97 = vector.shape_cast %96 : vector<1x8x8xf32> to vector<8x8xf32>
      %98 = arith.truncf %97 : vector<8x8xf32> to vector<8x8xbf16>
      %c3_77 = arith.constant 3 : index
      %c0_78 = arith.constant 0 : index
      %c0_79 = arith.constant 0 : index
      %99 = vector.load %arg8[%c3_77, %c0_78, %c0_79] : memref<4x8x32xbf16, #tpu.memory_space<vmem>>, vector<1x8x32xbf16>
      %100 = vector.shape_cast %99 : vector<1x8x32xbf16> to vector<8x32xbf16>
      %cst_80 = arith.constant dense<0.000000e+00> : vector<8x32xf32>
      %101 = tpu.matmul %98, %100, %cst_80 {dimension_numbers = #tpu.dot_dimension_numbers<[1], [0], [0], [1], [0, 0, 1, 1], [], []>} : vector<8x8xbf16>, vector<8x32xbf16>, vector<8x32xf32> -> vector<8x32xf32>
      %102 = arith.addf %95, %101 : vector<8x32xf32>
      %c0_81 = arith.constant 0 : index
      %c0_82 = arith.constant 0 : index
      %103 = vector.load %arg9[%c0_81, %c0_82] : memref<1x32xf32, #tpu.memory_space<vmem>>, vector<1x32xf32>
      %104 = vector.broadcast %103 : vector<1x32xf32> to vector<8x32xf32>
      %105 = arith.addf %102, %104 : vector<8x32xf32>
      %c0_83 = arith.constant 0 : index
      %c0_84 = arith.constant 0 : index
      %c0_85 = arith.constant 0 : index
      %106 = vector.load %arg10[%c0_83, %c0_84, %c0_85] : memref<1x8x32xf32, #tpu.memory_space<vmem>>, vector<1x8x32xf32>
      %107 = vector.shape_cast %106 : vector<1x8x32xf32> to vector<8x32xf32>
      %108 = vector.shape_cast %105 : vector<8x32xf32> to vector<1x8x32xf32>
      tpu.vector_store %arg10[%c0_83, %c0_84, %c0_85], %108 {strides = array<i32>} : memref<1x8x32xf32, #tpu.memory_space<vmem>>, vector<1x8x32xf32>,
    } else {
    }
    return
  }
  func.func @transform_0(%arg0: i32, %arg1: i32, %arg2: i32) -> (i32, i32, i32) {
    %c0_i32 = arith.constant 0 : i32
    %c0_i32_0 = arith.constant 0 : i32
    return %arg0, %arg1, %c0_i32 : i32, i32, i32
  }
  func.func @transform_1(%arg0: i32, %arg1: i32, %arg2: i32) -> (i32, i32, i32) {
    %c0_i32 = arith.constant 0 : i32
    %c0_i32_0 = arith.constant 0 : i32
    return %arg0, %arg2, %c0_i32 : i32, i32, i32
  }
  func.func @transform_2(%arg0: i32, %arg1: i32, %arg2: i32) -> (i32, i32, i32) {
    %c0_i32 = arith.constant 0 : i32
    %c0_i32_0 = arith.constant 0 : i32
    %c0_i32_1 = arith.constant 0 : i32
    %c0_i32_2 = arith.constant 0 : i32
    return %c0_i32, %c0_i32_0, %c0_i32_1 : i32, i32, i32
  }
  func.func @transform_3(%arg0: i32, %arg1: i32, %arg2: i32) -> (i32, i32, i32) {
    %c0_i32 = arith.constant 0 : i32
    %c0_i32_0 = arith.constant 0 : i32
    %c0_i32_1 = arith.constant 0 : i32
    %c0_i32_2 = arith.constant 0 : i32
    return %c0_i32, %c0_i32_0, %c0_i32_1 : i32, i32, i32
  }
  func.func @transform_4(%arg0: i32, %arg1: i32, %arg2: i32) -> (i32, i32, i32) {
    %c0_i32 = arith.constant 0 : i32
    %c0_i32_0 = arith.constant 0 : i32
    %c0_i32_1 = arith.constant 0 : i32
    %c0_i32_2 = arith.constant 0 : i32
    return %c0_i32, %c0_i32_0, %c0_i32_1 : i32, i32, i32
  }
  func.func @transform_5(%arg0: i32, %arg1: i32, %arg2: i32) -> (i32, i32, i32) {
    %c0_i32 = arith.constant 0 : i32
    %c0_i32_0 = arith.constant 0 : i32
    %c0_i32_1 = arith.constant 0 : i32
    %c0_i32_2 = arith.constant 0 : i32
    return %c0_i32, %c0_i32_0, %c0_i32_1 : i32, i32, i32
  }
  func.func @transform_6(%arg0: i32, %arg1: i32, %arg2: i32) -> (i32, i32) {
    %c0_i32 = arith.constant 0 : i32
    %c0_i32_0 = arith.constant 0 : i32
    %c0_i32_1 = arith.constant 0 : i32
    return %c0_i32, %c0_i32_0 : i32, i32
  }
  func.func @transform_7(%arg0: i32, %arg1: i32, %arg2: i32) -> (i32, i32, i32) {
    %c0_i32 = arith.constant 0 : i32
    %c0_i32_0 = arith.constant 0 : i32
    return %arg0, %arg1, %c0_i32 : i32, i32, i32
  }
}

</mosaic_0001>

<bundles_post_ra>
// kernel: multi_head_self_attention.1
= control target key start
LH: loop header
LB: loop body
LE: loop exit
PB: predicated region body
PF: predicated region fallthrough
CT: control target
= control target key end

     0   :  { %12 = vsyncpa [#allocation7], 0  ;;  %s2881_s0 = inlined_call_operand.vmem [shape: bf16[2,8,32], index: 0, kind: input, shape index: {}, may-alias: {0,1}]   ;;  %s2882_s1 = inlined_call_operand.vmem [shape: bf16[2,8,32], index: 1, kind: input, shape index: {}, may-alias: {0,1}]   ;;  %s2883_s2 = inlined_call_operand.vmem [shape: bf16[4,32,8], index: 2, kind: input, shape index: {}]   ;;  %s2884_s3 = inlined_call_operand.vmem [shape: bf16[4,32,8], index: 3, kind: input, shape index: {}]   ;;  %s2885_s4 = inlined_call_operand.vmem [shape: bf16[4,32,8], index: 4, kind: input, shape index: {}]   ;;  %s2886_s5 = inlined_call_operand.vmem [shape: bf16[4,8,32], index: 5, kind: input, shape index: {}]   ;;  %s2887_s6 = inlined_call_operand.vmem [shape: f32[1,32], index: 6, kind: input, shape index: {}]   ;;  %s2888_s7 = inlined_call_operand.hbm [shape: f32[2,8,32], index: 7, kind: output, shape index: {}]  }
   0x1   :  { %14 = vsyncpa [#allocation7 + $0x1], 0  ;;  %s2486_s24 = smov 0   ;;  %s2488_s25 = smov 0  }
   0x2   :  { %s2490_s26 = smov 0   ;;  %s2492_s27 = smov 0  }
   0x3   :  { %s2494_s28 = smov 0   ;;  %s2496_s29 = smov 0  }
   0x4 LB: > { %s1924_s30 = sadd.s32 4294967295, %s2439_s29   ;;  %s1925_s8 = sadd.s32 4294967294, %s2439_s29   ;;  %s2439_s29 = sphi %s2496_s29, %s20_s29   ;;  %s2435_s28 = sphi %s2494_s28, %s2895_s28   ;;  %s2431_s27 = sphi %s2492_s27, %s2894_s27   ;;  %s2427_s26 = sphi %s2490_s26, %s2893_s26   ;;  %s2423_s25 = sphi %s2488_s25, %s2892_s25   ;;  %s2419_s24 = sphi %s2486_s24, %s2891_s24  }
   0x5   : > { %s39_s9 = sadd.s32 1, %s2435_s28  ;;  %s209_s10 = sadd.s32 1, %s2427_s26 }
   0x6   : > { %p41_p0 = scmp.ge.s32.totalorder %s39_s9, 2  ;;  %p219_p1 = scmp.ne.s32.totalorder %s2427_s26, %s2423_s25 }
   0x7   : > { %p220_p2 = scmp.eq.s32.totalorder %s1924_s30, 1  ;;  %p225_p3 = scmp.ne.s32.totalorder %s2423_s25, %s2419_s24 }
   0x8   : > { %s2897_s9 = smov (%p41_p0, %s39_s9), 0  ;;  %p226_p5 = scmp.eq.s32.totalorder %s1925_s8, 1 }
   0x9   : > { %p2526_p4 = por %p220_p2, %p219_p1  ;;  %s204_s12 = ssub.s32 %s2435_s28, %s2897_s9 }
   0xa   : > { %p1928_p6 = scmp.ge.s32.totalorder %s2439_s29, 1  ;;  %p207_p7 = scmp.eq.s32.totalorder %s204_s12, 0 }
   0xb   : > { %p2533_p8 = por %p226_p5, %p225_p3  ;;  %p279_p9 = scmp.lt.s32.totalorder %s2439_s29, 3 }
   0xc   : > { %s2539_s14 = scalar_select %p207_p7, %s2427_s26, %s209_s10  }
   0xd   : > { %p280_p10 = pnand %p1928_p6, %p279_p9 }
   0xe   : > { %v2313_v0 = vld [vmem:[%s2883_s2] sm:$0xff] (!%p280_p10)   ;;  %v2441_v1 = vmov (!%p280_p10), 0.0   ;;  %v2314_v2 = vld [vmem:[%s2883_s2 + $0x10] sm:$0xff] (!%p280_p10)   ;;  %v2315_v3 = vld [vmem:[%s2883_s2 + $0x8] sm:$0xff] (!%p280_p10)   ;;  %vm2442_vm0 = vmmov (!%p280_p10), 0   ;;  %p320_p11 = scmp.lt.s32.totalorder (!%p280_p10), %s2431_s27, 1 }
   0xf   : > { %283 = sbr.rel (%p280_p10) target bundleno = 1305 (0x519), region = 48  ;;  %2084 = vmatprep.subr.bf16.mxu0 (!%p280_p10), %v2441_v1  ;;  %2092 = vmatprep.subr.bf16.mxu1 (!%p280_p10), %v2441_v1  ;;  %v2316_v4 = vld [vmem:[%s2883_s2 + $0x18] sm:$0xff] (!%p280_p10)   ;;  %vm356_vm1 = vcmask (!%p280_p10), 261120   ;;  %v2317_v5 = vld [vmem:[%s2883_s2 + $0x20] sm:$0xff] (!%p280_p10)   ;;  %v2318_v6 = vld [vmem:[%s2883_s2 + $0x30] sm:$0xff] (!%p280_p10)   ;;  %vm592_vm2 = vcmask (!%p280_p10), 64512  }
  0x10   : > { %2085 = vmatpush3.bf16.msra.mxu0 (!%p280_p10), %v2313_v0  ;;  %2088 = vmatprep.mubr.msk.bf16.mxu0 (!%p280_p10), %vm2442_vm0, %v2441_v1  ;;  %v2319_v8 = vld [vmem:[%s2883_s2 + $0x28] sm:$0xff] (!%p280_p10)   ;;  %v2320_v9 = vld [vmem:[%s2883_s2 + $0x38] sm:$0xff] (!%p280_p10)   ;;  %v2321_v10 = vld [vmem:[%s2884_s3] sm:$0xff] (!%p280_p10)   ;;  %593 = vst.msk [vmem:[#allocation5] sm:$0xff] (!%p280_p10), %vm592_vm2, %v2441_v1  ;;  %vm401_vm3 = vcmask (!%p280_p10), 60416   ;;  %vm1381_vm4 = vcmask (!%p280_p10), 1043456  }
  0x11   : > { %2093 = vmatpush3.bf16.msra.mxu1 (!%p280_p10), %v2314_v2  ;;  %2086 = vmatprep.subr.bf16.mxu0 (!%p280_p10), %v2441_v1  ;;  %v2322_v11 = vld [vmem:[%s2884_s3 + $0x10] sm:$0xff] (!%p280_p10)   ;;  %v2323_v12 = vld [vmem:[%s2884_s3 + $0x8] sm:$0xff] (!%p280_p10)   ;;  %v2324_v13 = vld [vmem:[%s2884_s3 + $0x18] sm:$0xff] (!%p280_p10)   ;;  %594 = vst.msk [vmem:[#allocation5 + $0x8] sm:$0xff] (!%p280_p10), %vm592_vm2, %v2441_v1  ;;  %vm583_vm5 = vcmask (!%p280_p10), 7168   ;;  %s317_s15 = sand.u32 (!%p280_p10), 1, %s2423_s25  }
  0x12   : > { %2094 = vmatprep.subr.bf16.mxu1 (!%p280_p10), %v2441_v1  ;;  %2096 = vmatprep.mubr.msk.bf16.mxu1 (!%p280_p10), %vm2442_vm0, %v2441_v1  ;;  %v2325_v15 = vld [vmem:[%s2884_s3 + $0x20] sm:$0xff] (!%p280_p10)   ;;  %v2326_v16 = vld [vmem:[%s2884_s3 + $0x30] sm:$0xff] (!%p280_p10)   ;;  %v2327_v17 = vld [vmem:[%s2884_s3 + $0x28] sm:$0xff] (!%p280_p10)   ;;  %595 = vst.msk [vmem:[#allocation5 + $0x10] sm:$0xff] (!%p280_p10), %vm592_vm2, %v2441_v1  ;;  %s2021_s19 = sshll.u32 (!%p280_p10), %s2431_s27, 7  ;;  %s1821_s8 = scalar_lea.sflag (!%p280_p10), [#allocation7], %s317_s15 }
  0x13   : > { %v2328_v18 = vld [vmem:[%s2884_s3 + $0x38] sm:$0xff] (!%p280_p10)   ;;  %v2329_v19 = vld [vmem:[%s2885_s4] sm:$0xff] (!%p280_p10)   ;;  %v2330_v20 = vld [vmem:[%s2885_s4 + $0x10] sm:$0xff] (!%p280_p10)   ;;  %596 = vst.msk [vmem:[#allocation5 + $0x18] sm:$0xff] (!%p280_p10), %vm592_vm2, %v2441_v1  ;;  %s2445_s10 = smov (!%p280_p10), [#allocation6]  }
  0x14   : > { %2087 = vmatpush3.bf16.msra.mxu0 (!%p280_p10), %v2315_v3  ;;  %v2331_v21 = vld [vmem:[%s2885_s4 + $0x8] sm:$0xff] (!%p280_p10)   ;;  %v2332_v22 = vld [vmem:[%s2885_s4 + $0x18] sm:$0xff] (!%p280_p10)   ;;  %v2333_v23 = vld [vmem:[%s2885_s4 + $0x20] sm:$0xff] (!%p280_p10)   ;;  %588 = vst.msk [vmem:[#allocation4] sm:$0xff] (!%p280_p10), %vm583_vm5, %v2441_v1  ;;  %s2365_s12 = sshll.u32 (!%p280_p10), %s2445_s10, 4  ;;  %s2366_s12 = int_to_ptr.vmem [resolvable:$false] %s2365_s12 }
  0x15   : > { %2095 = vmatpush3.bf16.msra.mxu1 (!%p280_p10), %v2316_v4  ;;  %2100 = vmatprep.subr.bf16.mxu0 (!%p280_p10), %v2441_v1  ;;  %v2334_v24 = vld [vmem:[%s2885_s4 + $0x30] sm:$0xff] (!%p280_p10)   ;;  %v2335_v25 = vld [vmem:[%s2885_s4 + $0x28] sm:$0xff] (!%p280_p10)   ;;  %v2336_v26 = vld [vmem:[%s2885_s4 + $0x38] sm:$0xff] (!%p280_p10)   ;;  %589 = vst.msk [vmem:[#allocation4 + $0x8] sm:$0xff] (!%p280_p10), %vm583_vm5, %v2441_v1 }
  0x16   : > { %s321_s23 = scalar_select %p320_p11, %s2431_s27, 1  ;;  %2108 = vmatprep.subr.bf16.mxu1 %v2441_v1  ;;  %590 = vst.msk [vmem:[#allocation4 + $0x10] sm:$0xff] %vm583_vm5, %v2441_v1  ;;  %591 = vst.msk [vmem:[#allocation4 + $0x18] sm:$0xff] %vm583_vm5, %v2441_v1 }
  0x18   : > { %s1930_s30 = sshll.u32 %s321_s23, 2  ;;  %s2833_s23 = scalar_lea.hbm %s2888_s7, %s2021_s19 }
  0x19   : > { %s326_s16 = scalar_lea.vmem %s2881_s0, %s1930_s30  ;;  %s333_s17 = scalar_lea.vmem %s2882_s1, %s1930_s30 }
  0x1a   : > { %v339_v7 = vld [vmem:[%s326_s16] sm:$0xf]  ;;  %s1929_s16 = sshll.u32 %s317_s15, 3 }
  0x1b   : > { %2089 = vmatmul.mubr.msk.bf16.vlgmr.msra.gmra.mrb[0].mxu0 %vm356_vm1, %v339_v7  ;;  %2097 = vmatmul.mubr.msk.bf16.vlgmr.msra.gmra.mrb[0].mxu1 %vm356_vm1, %v339_v7  ;;  %v597_v14 = vld [vmem:[%s333_s17] sm:$0xf]  ;;  %s319_s20 = scalar_lea.vmem [#allocation6], %s1929_s16  ;;  %s2367_s16 = scalar_lea.vmem %s2366_s12, 256 }
  0x1c   : > { %2101 = vmatpush3.bf16.msra.mxu0 %v2317_v5  ;;  %2109 = vmatpush3.bf16.msra.mxu1 %v2318_v6  ;;  %s1835_s21 = sshll.u32 %s319_s20, 4  ;;  %s2835_s21 = int_to_ptr.vmem [resolvable:$true] %s1835_s21 }
  0x1d   : > { %2102 = vmatprep.subr.bf16.mxu0 %v2441_v1  ;;  %2110 = vmatprep.subr.bf16.mxu1 %v2441_v1  ;;  %s2361_s27 = scalar_lea.vmem %s2835_s21, 128  ;;  %p2368_p1 = scmp.lt.s32.totalorder %s2835_s21, %s2366_s12 }
  0x1e   : > { %2104 = vmatprep.mubr.msk.bf16.mxu0 %vm2442_vm0, %v2441_v1  ;;  %2112 = vmatprep.mubr.msk.bf16.mxu1 %vm2442_vm0, %v2441_v1  ;;  %p2362_p12 = scmp.ne.s32.totalorder %s2835_s21, %s2361_s27  ;;  %p2369_p2 = scmp.lt.s32.totalorder %s2367_s16, %s2361_s27 }
  0x20   : > { %2103 = vmatpush3.bf16.msra.mxu0 %v2319_v8  ;;  %2111 = vmatpush3.bf16.msra.mxu1 %v2320_v9  ;;  %p2363_p13 = pnand %p2362_p12, %p2526_p4  ;;  %p2370_p3 = por %p2369_p2, %p2368_p1 }
  0x21   : > { %2116 = vmatprep.subr.bf16.mxu0 %v2441_v1  ;;  %2124 = vmatprep.subr.bf16.mxu1 %v2441_v1 }
  0x22   : > { %p2364_p0 = pneg %p2363_p13 }
  0x23   : > { %2105 = vmatmul.mubr.msk.bf16.vlgmr.msra.gmra.mrb[4].mxu0 %vm356_vm1, %v339_v7  ;;  %2113 = vmatmul.mubr.msk.bf16.vlgmr.msra.gmra.mrb[4].mxu1 %vm356_vm1, %v339_v7 }
  0x24   : > { %2117 = vmatpush3.bf16.msra.mxu0 %v2321_v10  ;;  %2125 = vmatpush3.bf16.msra.mxu1 %v2322_v11  ;;  %p2371_p5 = pnand %p2370_p3, %p2364_p0 }
  0x25   : > { %2118 = vmatprep.subr.bf16.mxu0 %v2441_v1  ;;  %2126 = vmatprep.subr.bf16.mxu1 %v2441_v1 }
  0x26   : > { %2120 = vmatprep.mubr.msk.bf16.mxu0 %vm2442_vm0, %v2441_v1  ;;  %2128 = vmatprep.mubr.msk.bf16.mxu1 %vm2442_vm0, %v2441_v1 }
  0x28   : > { %2119 = vmatpush3.bf16.msra.mxu0 %v2323_v12  ;;  %2127 = vmatpush3.bf16.msra.mxu1 %v2324_v13 }
  0x29   : > { %2132 = vmatprep.subr.bf16.mxu0 %v2441_v1  ;;  %2140 = vmatprep.subr.bf16.mxu1 %v2441_v1 }
  0x2b   : > { %2121 = vmatmul.mubr.msk.bf16.vlgmr.msra.gmra.mrb[8].mxu0 %vm356_vm1, %v597_v14  ;;  %2129 = vmatmul.mubr.msk.bf16.vlgmr.msra.gmra.mrb[8].mxu1 %vm356_vm1, %v597_v14 }
  0x2c   : > { %2133 = vmatpush3.bf16.msra.mxu0 %v2325_v15  ;;  %2141 = vmatpush3.bf16.msra.mxu1 %v2326_v16 }
  0x2d   : > { %2134 = vmatprep.subr.bf16.mxu0 %v2441_v1  ;;  %2142 = vmatprep.subr.bf16.mxu1 %v2441_v1 }
  0x2e   : > { %2136 = vmatprep.mubr.msk.bf16.mxu0 %vm2442_vm0, %v2441_v1  ;;  %2144 = vmatprep.mubr.msk.bf16.mxu1 %vm2442_vm0, %v2441_v1 }
  0x30   : > { %2135 = vmatpush3.bf16.msra.mxu0 %v2327_v17  ;;  %2143 = vmatpush3.bf16.msra.mxu1 %v2328_v18 }
  0x31   : > { %2148 = vmatprep.subr.bf16.mxu0 %v2441_v1  ;;  %2156 = vmatprep.subr.bf16.mxu1 %v2441_v1 }
  0x33   : > { %2137 = vmatmul.mubr.msk.bf16.vlgmr.msra.gmra.mrb[12].mxu0 %vm356_vm1, %v597_v14  ;;  %2145 = vmatmul.mubr.msk.bf16.vlgmr.msra.gmra.mrb[12].mxu1 %vm356_vm1, %v597_v14 }
  0x34   : > { %2149 = vmatpush3.bf16.msra.mxu0 %v2329_v19  ;;  %2157 = vmatpush3.bf16.msra.mxu1 %v2330_v20 }
  0x35   : > { %2150 = vmatprep.subr.bf16.mxu0 %v2441_v1  ;;  %2158 = vmatprep.subr.bf16.mxu1 %v2441_v1 }
  0x36   : > { %2152 = vmatprep.mubr.msk.bf16.mxu0 %vm2442_vm0, %v2441_v1  ;;  %2160 = vmatprep.mubr.msk.bf16.mxu1 %vm2442_vm0, %v2441_v1 }
  0x38   : > { %2151 = vmatpush3.bf16.msra.mxu0 %v2331_v21  ;;  %2159 = vmatpush3.bf16.msra.mxu1 %v2332_v22 }
  0x39   : > { %2164 = vmatprep.subr.bf16.mxu0 %v2441_v1  ;;  %2172 = vmatprep.subr.bf16.mxu1 %v2441_v1 }
  0x3b   : > { %2153 = vmatmul.mubr.msk.bf16.vlgmr.msra.gmra.mrb[16].mxu0 %vm356_vm1, %v597_v14  ;;  %2161 = vmatmul.mubr.msk.bf16.vlgmr.msra.gmra.mrb[16].mxu1 %vm356_vm1, %v597_v14 }
  0x3c   : > { %2165 = vmatpush3.bf16.msra.mxu0 %v2333_v23  ;;  %2168 = vmatprep.mubr.msk.bf16.mxu0 %vm2442_vm0, %v2441_v1 }
  0x3d   : > { %2166 = vmatprep.subr.bf16.mxu0 %v2441_v1  ;;  %2173 = vmatpush3.bf16.msra.mxu1 %v2334_v24 }
  0x3e   : > { %2176 = vmatprep.mubr.msk.bf16.mxu1 %vm2442_vm0, %v2441_v1  ;;  %2174 = vmatprep.subr.bf16.mxu1 %v2441_v1 }
  0x40   : > { %2167 = vmatpush3.bf16.msra.mxu0 %v2335_v25 }
  0x41   : > { %2175 = vmatpush3.bf16.msra.mxu1 %v2336_v26  ;;  %2180 = vmatprep.subr.bf16.mxu0 %v2441_v1 }
  0x42   : > { %2186 = vmatprep.subr.bf16.mxu1 %v2441_v1 }
  0x43   : > { %2169 = vmatmul.mubr.msk.bf16.vlgmr.msra.gmra.mrb[20].mxu0 %vm356_vm1, %v597_v14 }
  0x44   : > { %2177 = vmatmul.mubr.msk.bf16.vlgmr.msra.gmra.mrb[20].mxu1 %vm356_vm1, %v597_v14  ;;  %2182 = vmatprep.mubr.msk.bf16.mxu0 %vm2442_vm0, %v2441_v1 }
  0x45   : > { %2188 = vmatprep.mubr.msk.bf16.mxu1 %vm2442_vm0, %v2441_v1 }
  0xee   : > { %v394_v27 = vpop.f32.mrb[0].mxu0  ;;  %v454_v30 = vpop.f32.mrb[0].mxu1 }
  0xef   : > { %v400_v28 = vpack.c.bf16 %v394_v27, %v394_v27  ;;  %v2090_v29 = vpop.f32.mrb[1].mxu0  ;;  %v460_v31 = vpack.c.bf16 %v454_v30, %v454_v30  ;;  %v2098_v33 = vpop.f32.mrb[1].mxu1 }
  0xf0   : > { %v397_v32 = vpop.f32.mrb[2].mxu0  ;;  %v457_v35 = vpop.f32.mrb[2].mxu1 }
  0xf1   : > { %402 = vst.msk [vmem:[#allocation2] sm:$0xf] %vm401_vm3, %v400_v28  ;;  %v2091_v34 = vpop.f32.mrb[3].mxu0  ;;  %462 = vst.msk [vmem:[#allocation2 + $0x4] sm:$0xf] %vm401_vm3, %v460_v31  ;;  %v2099_v36 = vpop.f32.mrb[3].mxu1 }
  0xf2   : > { %v2443_v32 = vmov -inf  }
  0xf3   : > { %584 = vst.msk [vmem:[#allocation3] sm:$0xff] %vm583_vm5, %v2443_v32  ;;  %585 = vst.msk [vmem:[#allocation3 + $0x8] sm:$0xff] %vm583_vm5, %v2443_v32 }
  0xf4   : > { %586 = vst.msk [vmem:[#allocation3 + $0x10] sm:$0xff] %vm583_vm5, %v2443_v32  ;;  %587 = vst.msk [vmem:[#allocation3 + $0x18] sm:$0xff] %vm583_vm5, %v2443_v32 }
  0xf6   : > { %v514_v37 = vpop.f32.mrb[4].mxu0  ;;  %v574_v40 = vpop.f32.mrb[4].mxu1 }
  0xf7   : > { %v520_v38 = vpack.c.bf16 %v514_v37, %v514_v37  ;;  %v2106_v39 = vpop.f32.mrb[5].mxu0  ;;  %v580_v41 = vpack.c.bf16 %v574_v40, %v574_v40  ;;  %v2114_v43 = vpop.f32.mrb[5].mxu1 }
  0xf8   : > { %v517_v42 = vpop.f32.mrb[6].mxu0  ;;  %v577_v45 = vpop.f32.mrb[6].mxu1  ;;  %v1064_v2 = vld [vmem:[#allocation2] sm:$0xf]  ;;  %v1065_v6 = vld [vmem:[#allocation2 + $0x4] sm:$0xf] }
  0xf9   : > { %522 = vst.msk [vmem:[#allocation2 + $0x8] sm:$0xf] %vm401_vm3, %v520_v38  ;;  %v2107_v44 = vpop.f32.mrb[7].mxu0  ;;  %582 = vst.msk [vmem:[#allocation2 + $0xc] sm:$0xf] %vm401_vm3, %v580_v41  ;;  %v2115_v46 = vpop.f32.mrb[7].mxu1 }
  0xfe   : > { %v652_v47 = vpop.f32.mrb[8].mxu0  ;;  %v709_v49 = vpop.f32.mrb[8].mxu1 }
  0xff   : > { %v829_v48 = vpack.c.bf16 %v652_v47, %v652_v47  ;;  %v2122_v50 = vpop.f32.mrb[9].mxu0  ;;  %v830_v51 = vpack.c.bf16 %v709_v49, %v709_v49  ;;  %v2130_v53 = vpop.f32.mrb[9].mxu1 }
 0x100   : > { %v655_v52 = vpop.f32.mrb[10].mxu0  ;;  %v712_v56 = vpop.f32.mrb[10].mxu1  ;;  %v1066_v10 = vld [vmem:[#allocation2 + $0x8] sm:$0xf]  ;;  %v1067_v11 = vld [vmem:[#allocation2 + $0xc] sm:$0xf] }
 0x101   : > { %v1073_v54 = vsel %vm592_vm2, %v829_v48, 0  ;;  %v2123_v55 = vpop.f32.mrb[11].mxu0  ;;  %v1119_v57 = vsel %vm592_vm2, %v830_v51, 0  ;;  %v2131_v58 = vpop.f32.mrb[11].mxu1  ;;  %v2444_v53 = vmov 0  }
 0x102   : > { %2181 = vmatpush3.bf16.xpose.msra.mxu0 %v1073_v54  ;;  %2187 = vmatpush3.bf16.xpose.msra.mxu1 %v1119_v57  ;;  %v1253_v54 = vld [vmem:[#allocation3] sm:$0xff]  ;;  %v2743_v57 = vld [vmem:[#allocation3 + $0x8] sm:$0xff] }
 0x103   : > { %2192 = vmatprep.subr.bf16.mxu0 %v2441_v1  ;;  %2198 = vmatprep.subr.bf16.mxu1 %v2441_v1 }
 0x104   : > { %2311 = vset.pattern.permute.xlu0 %v2444_v53  ;;  %2312 = vset.pattern.permute.xlu1 %v2444_v53 }
 0x106   : > { %v766_v59 = vpop.f32.mrb[12].mxu0  ;;  %v823_v61 = vpop.f32.mrb[12].mxu1 }
 0x107   : > { %v831_v60 = vpack.c.bf16 %v766_v59, %v766_v59  ;;  %v2138_v62 = vpop.f32.mrb[13].mxu0  ;;  %v832_v63 = vpack.c.bf16 %v823_v61, %v823_v61  ;;  %v2146_v3 = vpop.f32.mrb[13].mxu1  ;;  %v2749_v61 = vld [vmem:[#allocation3 + $0x10] sm:$0xff] }
 0x108   : > { %v769_v0 = vpop.f32.mrb[14].mxu0  ;;  %v826_v7 = vpop.f32.mrb[14].mxu1 }
 0x109   : > { %v1165_v4 = vsel %vm592_vm2, %v831_v60, 0  ;;  %v2139_v5 = vpop.f32.mrb[15].mxu0  ;;  %2183 = vmatmul.mubr.msk.bf16.vlgmr.msra.gmra.mrb[24].mxu0 %vm592_vm2, %v1064_v2  ;;  %v1211_v8 = vsel %vm592_vm2, %v832_v63, 0  ;;  %2189 = vmatmul.mubr.msk.bf16.vlgmr.msra.gmra.mrb[24].mxu1 %vm592_vm2, %v1065_v6  ;;  %v2147_v9 = vpop.f32.mrb[15].mxu1  ;;  %v2757_v2 = vld [vmem:[#allocation3 + $0x18] sm:$0xff] }
 0x10a   : > { %2193 = vmatpush3.bf16.xpose.msra.mxu0 %v1165_v4  ;;  %2199 = vmatpush3.bf16.xpose.msra.mxu1 %v1211_v8 }
 0x10b   : > { %2194 = vmatprep.mubr.msk.bf16.mxu0 %vm2442_vm0, %v2441_v1  ;;  %2200 = vmatprep.mubr.msk.bf16.mxu1 %vm2442_vm0, %v2441_v1 }
 0x10c   : > { %2204 = vmatprep.subr.bf16.mxu0 %v2441_v1  ;;  %2210 = vmatprep.subr.bf16.mxu1 %v2441_v1 }
 0x10e   : > { %v883_v12 = vpop.f32.mrb[16].mxu0  ;;  %v940_v16 = vpop.f32.mrb[16].mxu1 }
 0x10f   : > { %v1060_v13 = vpack.c.bf16 %v883_v12, %v883_v12  ;;  %v2154_v14 = vpop.f32.mrb[17].mxu0  ;;  %v1061_v19 = vpack.c.bf16 %v940_v16, %v940_v16  ;;  %v2162_v20 = vpop.f32.mrb[17].mxu1 }
 0x110   : > { %v886_v15 = vpop.f32.mrb[18].mxu0  ;;  %v943_v21 = vpop.f32.mrb[18].mxu1 }
 0x111   : > { %2195 = vmatmul.mubr.msk.bf16.vlgmr.msra.gmra.mrb[28].mxu0 %vm592_vm2, %v1066_v10  ;;  %2201 = vmatmul.mubr.msk.bf16.vlgmr.msra.gmra.mrb[28].mxu1 %vm592_vm2, %v1067_v11  ;;  %v1383_v17 = vsel %vm1381_vm4, %v1060_v13, 0  ;;  %v2155_v18 = vpop.f32.mrb[19].mxu0  ;;  %v1429_v22 = vsel %vm1381_vm4, %v1061_v19, 0  ;;  %v2163_v23 = vpop.f32.mrb[19].mxu1 }
 0x112   : > { %2206 = vmatprep.mubr.msk.bf16.mxu0 %vm2442_vm0, %v2441_v1  ;;  %2212 = vmatprep.mubr.msk.bf16.mxu1 %vm2442_vm0, %v2441_v1 }
 0x113   : > { %2205 = vmatpush3.bf16.msra.mxu0 %v1383_v17  ;;  %2211 = vmatpush3.bf16.msra.mxu1 %v1429_v22 }
 0x114   : > { %2216 = vmatprep.subr.bf16.mxu0 %v2441_v1  ;;  %2222 = vmatprep.subr.bf16.mxu1 %v2441_v1 }
 0x116   : > { %v2723_v24 = vpop.f32.mrb[20].mxu0 }
 0x117   : > { %v2725_v25 = vpop.f32.mrb[20].mxu1  ;;  %v2170_v26 = vpop.f32.mrb[21].mxu0  ;;  %v1062_v18 = vpack.c.bf16 %v2723_v24, %v2723_v24 }
 0x118   : > { %v2178_v27 = vpop.f32.mrb[21].mxu1  ;;  %v1000_v28 = vpop.f32.mrb[22].mxu0  ;;  %v1063_v26 = vpack.c.bf16 %v2725_v25, %v2725_v25 }
 0x119   : > { %v1057_v29 = vpop.f32.mrb[22].mxu1  ;;  %v2171_v30 = vpop.f32.mrb[23].mxu0  ;;  %v1475_v23 = vsel %vm1381_vm4, %v1062_v18, 0 }
 0x11a   : > { %v2179_v31 = vpop.f32.mrb[23].mxu1  ;;  %v1521_v29 = vsel %vm1381_vm4, %v1063_v26, 0 }
 0x1dc   : > { %v1109_v33 = vpop.f32.mrb[24].mxu0  ;;  %v1155_v34 = vpop.f32.mrb[24].mxu1 }
 0x1dd   : > { %v2184_v35 = vpop.f32.mrb[25].mxu0  ;;  %v1257_v36 = vsel %vm592_vm2, %v1109_v33, -inf  ;;  %v2190_v37 = vpop.f32.mrb[25].mxu1  ;;  %v1260_v42 = vsel %vm592_vm2, %v1155_v34, -inf }
 0x1de   : > { %1258 = vmax.xlane.f32.xlu0 %v1257_v36  ;;  %v1112_v38 = vpop.f32.mrb[26].mxu0  ;;  %v1158_v39 = vpop.f32.mrb[26].mxu1 }
 0x1df   : > { %v2185_v40 = vpop.f32.mrb[27].mxu0  ;;  %v2191_v41 = vpop.f32.mrb[27].mxu1 }
 0x1e2   : > { %1261 = vmax.xlane.f32.xlu0 %v1260_v42 }
 0x1e4   : > { %v1201_v43 = vpop.f32.mrb[28].mxu0  ;;  %v1247_v44 = vpop.f32.mrb[28].mxu1 }
 0x1e5   : > { %v2196_v45 = vpop.f32.mrb[29].mxu0  ;;  %v1263_v46 = vsel %vm592_vm2, %v1201_v43, -inf  ;;  %v2202_v47 = vpop.f32.mrb[29].mxu1  ;;  %v1266_v52 = vsel %vm592_vm2, %v1247_v44, -inf }
 0x1e6   : > { %1264 = vmax.xlane.f32.xlu1 %v1263_v46  ;;  %v1204_v48 = vpop.f32.mrb[30].mxu0  ;;  %v1250_v49 = vpop.f32.mrb[30].mxu1  ;;  %v1318_v46 = vld [vmem:[#allocation4 + $0x8] sm:$0xff] }
 0x1e7   : > { %v2197_v50 = vpop.f32.mrb[31].mxu0  ;;  %v2203_v51 = vpop.f32.mrb[31].mxu1 }
 0x1e8   : > { %v1319_v50 = vld [vmem:[#allocation4 + $0x10] sm:$0xff] }
 0x1ea   : > { %1267 = vmax.xlane.f32.xlu1 %v1266_v52 }
 0x26b   : > { %v1259_v55 = vpop.xlane.xlu0 %1258 }
 0x26c   : > { %v1269_v56 = vmax.f32 %v1253_v54, %v1259_v55 }
 0x26e   : > { %v1273_v58 = vsub.f32 %v1253_v54, %v1269_v56  ;;  %1571 = vst.msk [vmem:[#allocation3] sm:$0xff] %vm583_vm5, %v1269_v56  ;;  %1287 = vperm.xlu0 %2311, %v1269_v56   ;;  %v1320_v54 = vld [vmem:[#allocation4 + $0x18] sm:$0xff] }
 0x26f   : > { %v1262_v59 = vpop.xlane.xlu0 %1261 }
 0x270   : > { %v2747_v60 = vmax.f32 %v2743_v57, %v1262_v59  ;;  %v1277_v25 = vmul.f32 1.442695, %v1273_v58 }
 0x272   : > { %v1274_v62 = vsub.f32 %v2743_v57, %v2747_v60  ;;  %1572 = vst.msk [vmem:[#allocation3 + $0x8] sm:$0xff] %vm583_vm5, %v2747_v60  ;;  %1292 = vperm.xlu1 %2312, %v2747_v60  }
 0x273   : > { %v1265_v63 = vpop.xlane.xlu1 %1264 }
 0x274   : > { %v1271_v0 = vmax.f32 %v2749_v61, %v1265_v63  ;;  %v1279_v36 = vmul.f32 1.442695, %v1274_v62 }
 0x276   : > { %v1275_v3 = vsub.f32 %v2749_v61, %v1271_v0  ;;  %1573 = vst.msk [vmem:[#allocation3 + $0x10] sm:$0xff] %vm583_vm5, %v1271_v0  ;;  %1297 = vperm.xlu1 %2312, %v1271_v0   ;;  %v1615_v0 = vld [vmem:[%s2886_s5] sm:$0xf] }
 0x277   : > { %v1268_v4 = vpop.xlane.xlu1 %1267 }
 0x278   : > { %v1272_v5 = vmax.f32 %v2757_v2, %v1268_v4  ;;  %v1281_v37 = vmul.f32 1.442695, %v1275_v3  ;;  %v2012_v3 = vld [vmem:[%s2886_s5 + $0x4] sm:$0xf] }
 0x27a   : > { %v1276_v6 = vsub.f32 %v2757_v2, %v1272_v5  ;;  %1574 = vst.msk [vmem:[#allocation3 + $0x18] sm:$0xff] %vm583_vm5, %v1272_v5  ;;  %1302 = vperm.xlu1 %2312, %v1272_v5   ;;  %v1669_v2 = vsel %vm1381_vm4, %v1615_v0, 0  ;;  %v1623_v5 = vsel %vm1381_vm4, %v2012_v3, 0 }
 0x27c   : > { %v1283_v39 = vmul.f32 1.442695, %v1276_v6 }
 0x2ed   : > { %v1288_v7 = vpop.permute.xlu0 %1287 }
 0x2ee   : > { %v1305_v8 = vsub.f32 %v1109_v33, %v1288_v7 }
 0x2f0   : > { %v1309_v9 = vmul.f32 1.442695, %v1305_v8  ;;  %v1346_v8 = vld [vmem:[#allocation5] sm:$0xff] }
 0x2f1   : > { %v1293_v10 = vpop.permute.xlu1 %1292 }
 0x2f2   : > { %2337 = vpow2.f32 %v1309_v9  ;;  %v1306_v11 = vsub.f32 %v1155_v34, %v1293_v10 }
 0x2f4   : > { %v1311_v12 = vmul.f32 1.442695, %v1306_v11 }
 0x2f5   : > { %v1298_v13 = vpop.permute.xlu1 %1297 }
 0x2f6   : > { %2339 = vpow2.f32 %v1311_v12  ;;  %v1307_v14 = vsub.f32 %v1201_v43, %v1298_v13  ;;  %v1317_v43 = vld [vmem:[#allocation4] sm:$0xff]  ;;  %v1347_v12 = vld [vmem:[#allocation5 + $0x8] sm:$0xff] }
 0x2f8   : > { %v1313_v15 = vmul.f32 1.442695, %v1307_v14 }
 0x2f9   : > { %v1303_v16 = vpop.permute.xlu1 %1302 }
 0x2fa   : > { %2341 = vpow2.f32 %v1313_v15  ;;  %v1308_v17 = vsub.f32 %v1247_v44, %v1303_v16 }
 0x2fc   : > { %v2338_v19 = vpop.eup %2337  ;;  %v1315_v20 = vmul.f32 1.442695, %v1308_v17 }
 0x2fd   : > { %v1325_v21 = vsel %vm592_vm2, %v2338_v19, 0.0  ;;  %v1374_v22 = vpack.c.bf16 %v2338_v19, %v2338_v19 }
 0x2fe   : > { %2343 = vpow2.f32 %v1315_v20  ;;  %1326 = vadd.xlane.f32.xlu0 %v1325_v21  ;;  %v1348_v20 = vld [vmem:[#allocation5 + $0x10] sm:$0xff] }
 0x2ff   : > { %2207 = vmatmul.mubr.msk.bf16.vlgmr.msra.gmra.mrb[32].mxu0 %vm592_vm2, %v1374_v22  ;;  %2345 = vpow2.f32 %v1277_v25 }
 0x300   : > { %v2340_v27 = vpop.eup %2339  ;;  %2217 = vmatpush3.bf16.msra.mxu0 %v1475_v23  ;;  %2218 = vmatprep.mubr.msk.bf16.mxu0 %vm2442_vm0, %v2441_v1  ;;  %2347 = vpow2.f32 %v1279_v36 }
 0x301   : > { %v1328_v24 = vsel %vm592_vm2, %v2340_v27, 0.0  ;;  %v1375_v28 = vpack.c.bf16 %v2340_v27, %v2340_v27  ;;  %2228 = vmatprep.subr.bf16.mxu0 %v2441_v1  ;;  %2349 = vpow2.f32 %v1281_v37 }
 0x302   : > { %1329 = vadd.xlane.f32.xlu1 %v1328_v24  ;;  %2351 = vpow2.f32 %v1283_v39 }
 0x303   : > { %2213 = vmatmul.mubr.msk.bf16.vlgmr.msra.gmra.mrb[32].mxu1 %vm592_vm2, %v1375_v28  ;;  %v1349_v28 = vld [vmem:[#allocation5 + $0x18] sm:$0xff] }
 0x304   : > { %v2342_v30 = vpop.eup %2341  ;;  %2223 = vmatpush3.bf16.msra.mxu1 %v1521_v29  ;;  %2224 = vmatprep.mubr.msk.bf16.mxu1 %vm2442_vm0, %v2441_v1 }
 0x305   : > { %v1331_v31 = vsel %vm592_vm2, %v2342_v30, 0.0  ;;  %v1376_v32 = vpack.c.bf16 %v2342_v30, %v2342_v30  ;;  %2234 = vmatprep.subr.bf16.mxu1 %v2441_v1 }
 0x306   : > { %1332 = vadd.xlane.f32.xlu1 %v1331_v31 }
 0x307   : > { %2219 = vmatmul.mubr.msk.bf16.vlgmr.msra.gmra.mrb[36].mxu0 %vm592_vm2, %v1376_v32 }
 0x308   : > { %v2344_v33 = vpop.eup %2343  ;;  %2230 = vmatprep.mubr.msk.bf16.mxu0 %vm2442_vm0, %v2441_v1  ;;  %2229 = vmatpush3.bf16.msra.mxu0 %v1623_v5 }
 0x309   : > { %v1334_v34 = vsel %vm592_vm2, %v2344_v33, 0.0  ;;  %v1377_v35 = vpack.c.bf16 %v2344_v33, %v2344_v33  ;;  %v2346_v38 = vpop.eup %2345  ;;  %2240 = vmatprep.subr.bf16.mxu0 %v2441_v1 }
 0x30a   : > { %1335 = vadd.xlane.f32.xlu1 %v1334_v34  ;;  %v2348_v40 = vpop.eup %2347  ;;  %v1321_v44 = vmul.f32 %v2346_v38, %v1317_v43 }
 0x30b   : > { %2225 = vmatmul.mubr.msk.bf16.vlgmr.msra.gmra.mrb[36].mxu1 %vm592_vm2, %v1377_v35  ;;  %v2350_v41 = vpop.eup %2349  ;;  %v1322_v48 = vmul.f32 %v2348_v40, %v1318_v46 }
 0x30c   : > { %2236 = vmatprep.mubr.msk.bf16.mxu1 %vm2442_vm0, %v2441_v1  ;;  %v2352_v42 = vpop.eup %2351  ;;  %v1323_v52 = vmul.f32 %v2350_v41, %v1319_v50  ;;  %2235 = vmatpush3.bf16.msra.mxu1 %v1669_v2 }
 0x30d   : > { %v1324_v57 = vmul.f32 %v2352_v42, %v1320_v54  ;;  %2246 = vmatprep.subr.bf16.mxu1 %v2441_v1 }
 0x314   : > { %1352 = vperm.xlu0 %2311, %v2346_v38  }
 0x31b   : > { %1357 = vperm.xlu1 %2312, %v2348_v40  }
 0x31f   : > { %1362 = vperm.xlu1 %2312, %v2350_v41  }
 0x323   : > { %1367 = vperm.xlu1 %2312, %v2352_v42   ;;  %v2017_v42 = vld [vmem:[%s2886_s5 + $0xc] sm:$0xf] }
 0x38b   : > { %v1327_v45 = vpop.xlane.xlu0 %1326 }
 0x38c   : > { %v1337_v47 = vadd.f32 %v1327_v45, %v1321_v44  ;;  %v1768_v45 = vsel %vm1381_vm4, %v2017_v42, 0 }
 0x38e   : > { %1342 = vst.msk [vmem:[#allocation4] sm:$0xff] %vm583_vm5, %v1337_v47 }
 0x38f   : > { %v1330_v49 = vpop.xlane.xlu1 %1329 }
 0x390   : > { %v1338_v51 = vadd.f32 %v1330_v49, %v1322_v48  ;;  %v2015_v48 = vld [vmem:[%s2886_s5 + $0x8] sm:$0xf] }
 0x392   : > { %1343 = vst.msk [vmem:[#allocation4 + $0x8] sm:$0xff] %vm583_vm5, %v1338_v51  ;;  %v1718_v51 = vsel %vm1381_vm4, %v2015_v48, 0 }
 0x393   : > { %v1333_v53 = vpop.xlane.xlu1 %1332  ;;  %v1353_v9 = vpop.permute.xlu0 %1352 }
 0x394   : > { %v1339_v55 = vadd.f32 %v1333_v53, %v1323_v52  ;;  %v1370_v11 = vmul.f32 %v1353_v9, %v1346_v8 }
 0x395   : > { %v1578_v56 = vld [vmem:[#allocation4] sm:$0xff] }
 0x396   : > { %1344 = vst.msk [vmem:[#allocation4 + $0x10] sm:$0xff] %vm583_vm5, %v1339_v55  ;;  %2353 = vrcp.f32 %v1578_v56 }
 0x397   : > { %v1336_v58 = vpop.xlane.xlu1 %1335 }
 0x398   : > { %v1340_v59 = vadd.f32 %v1336_v58, %v1324_v57 }
 0x399   : > { %v1579_v60 = vld [vmem:[#allocation4 + $0x8] sm:$0xff] }
 0x39a   : > { %1345 = vst.msk [vmem:[#allocation4 + $0x18] sm:$0xff] %vm583_vm5, %v1340_v59  ;;  %2355 = vrcp.f32 %v1579_v60 }
 0x39b   : > { %v1358_v10 = vpop.permute.xlu1 %1357 }
 0x39c   : > { %v1371_v18 = vmul.f32 %v1358_v10, %v1347_v12  ;;  %v2019_v10 = vld [vmem:[%s2887_s6] ss:$0 sm:$0xff] }
 0x39d   : > { %v1580_v61 = vld [vmem:[#allocation4 + $0x10] sm:$0xff] }
 0x39e   : > { %2357 = vrcp.f32 %v1580_v61 }
 0x39f   : > { %v1363_v16 = vpop.permute.xlu1 %1362 }
 0x3a0   : > { %v2354_v62 = vpop.eup %2353  ;;  %v1372_v27 = vmul.f32 %v1363_v16, %v1348_v20 }
 0x3a1   : > { %1592 = vperm.xlu0 %2311, %v2354_v62   ;;  %v1581_v63 = vld [vmem:[#allocation4 + $0x18] sm:$0xff] }
 0x3a2   : > { %2359 = vrcp.f32 %v1581_v63 }
 0x3a3   : > { %v1368_v29 = vpop.permute.xlu1 %1367 }
 0x3a4   : > { %v2356_v4 = vpop.eup %2355  ;;  %v1373_v33 = vmul.f32 %v1368_v29, %v1349_v28 }
 0x3a5   : > { %1597 = vperm.xlu1 %2312, %v2356_v4  }
 0x3a8   : > { %v2358_v6 = vpop.eup %2357 }
 0x3a9   : > { %1602 = vperm.xlu1 %2312, %v2358_v6  }
 0x3ac   : > { %v2360_v7 = vpop.eup %2359 }
 0x3ad   : > { %1607 = vperm.xlu0 %2311, %v2360_v7  }
 0x3d2   : > { %v1419_v13 = vpop.f32.mrb[32].mxu0 }
 0x3d3   : > { %v1563_v14 = vadd.f32 %v1419_v13, %v1370_v11  ;;  %v2208_v15 = vpop.f32.mrb[33].mxu0 }
 0x3d4   : > { %v1422_v17 = vpop.f32.mrb[34].mxu0 }
 0x3d5   : > { %1567 = vst.msk [vmem:[#allocation5] sm:$0xff] %vm592_vm2, %v1563_v14  ;;  %v2209_v19 = vpop.f32.mrb[35].mxu0 }
 0x3d6   : > { %v1465_v21 = vpop.f32.mrb[32].mxu1 }
 0x3d7   : > { %v1564_v22 = vadd.f32 %v1465_v21, %v1371_v18  ;;  %v2214_v23 = vpop.f32.mrb[33].mxu1 }
 0x3d8   : > { %v1468_v26 = vpop.f32.mrb[34].mxu1 }
 0x3d9   : > { %1568 = vst.msk [vmem:[#allocation5 + $0x8] sm:$0xff] %vm592_vm2, %v1564_v22  ;;  %v2215_v24 = vpop.f32.mrb[35].mxu1 }
 0x3da   : > { %v1511_v30 = vpop.f32.mrb[36].mxu0 }
 0x3db   : > { %v1565_v25 = vadd.f32 %v1511_v30, %v1372_v27  ;;  %v2220_v31 = vpop.f32.mrb[37].mxu0 }
 0x3dc   : > { %v1514_v32 = vpop.f32.mrb[38].mxu0  ;;  %v1586_v41 = vld [vmem:[#allocation5] sm:$0xff] }
 0x3dd   : > { %1569 = vst.msk [vmem:[#allocation5 + $0x10] sm:$0xff] %vm592_vm2, %v1565_v25  ;;  %v2221_v34 = vpop.f32.mrb[39].mxu0 }
 0x3de   : > { %v1557_v35 = vpop.f32.mrb[36].mxu1 }
 0x3df   : > { %v1566_v36 = vadd.f32 %v1557_v35, %v1373_v33  ;;  %v2226_v37 = vpop.f32.mrb[37].mxu1 }
 0x3e0   : > { %v1560_v38 = vpop.f32.mrb[38].mxu1  ;;  %v1587_v46 = vld [vmem:[#allocation5 + $0x8] sm:$0xff] }
 0x3e1   : > { %1570 = vst.msk [vmem:[#allocation5 + $0x18] sm:$0xff] %vm592_vm2, %v1566_v36  ;;  %v2227_v39 = vpop.f32.mrb[39].mxu1 }
 0x3e4   : > { %v1588_v53 = vld [vmem:[#allocation5 + $0x10] sm:$0xff] }
 0x3e8   : > { %v1589_v56 = vld [vmem:[#allocation5 + $0x18] sm:$0xff] }
 0x420   : > { %v1593_v40 = vpop.permute.xlu0 %1592 }
 0x421   : > { %v1610_v43 = vmul.f32 %v1593_v40, %v1586_v41 }
 0x423   : > { %v1614_v44 = vpack.c.bf16 %v1610_v43, %v1610_v43 }
 0x424   : > { %v1598_v47 = vpop.permute.xlu1 %1597 }
 0x425   : > { %v1611_v49 = vmul.f32 %v1598_v47, %v1587_v46  ;;  %2237 = vmatmul.mubr.msk.bf16.vlgmr.msra.gmra.mrb[40].mxu1 %vm592_vm2, %v1614_v44 }
 0x426   : > { %2247 = vmatpush3.bf16.msra.mxu1 %v1768_v45  ;;  %2248 = vmatprep.mubr.msk.bf16.mxu1 %vm2442_vm0, %v2441_v1 }
 0x427   : > { %v1616_v50 = vpack.c.bf16 %v1611_v49, %v1611_v49 }
 0x428   : > { %v1603_v52 = vpop.permute.xlu1 %1602 }
 0x429   : > { %2231 = vmatmul.mubr.msk.bf16.vlgmr.msra.gmra.mrb[40].mxu0 %vm592_vm2, %v1616_v50  ;;  %v1612_v54 = vmul.f32 %v1603_v52, %v1588_v53 }
 0x42a   : > { %2241 = vmatpush3.bf16.msra.mxu0 %v1718_v51  ;;  %2242 = vmatprep.mubr.msk.bf16.mxu0 %vm2442_vm0, %v2441_v1 }
 0x42b   : > { %v1711_v58 = vpack.c.bf16 %v1612_v54, %v1612_v54 }
 0x42c   : > { %v1608_v55 = vpop.permute.xlu0 %1607 }
 0x42d   : > { %v1613_v57 = vmul.f32 %v1608_v55, %v1589_v56 }
 0x42f   : > { %v1761_v59 = vpack.c.bf16 %v1613_v57, %v1613_v57 }
 0x431   : > { %2243 = vmatmul.mubr.msk.bf16.vlgmr.msra.gmra.mrb[44].mxu0 %vm592_vm2, %v1711_v58  ;;  %2249 = vmatmul.mubr.msk.bf16.vlgmr.msra.gmra.mrb[44].mxu1 %vm592_vm2, %v1761_v59 }
 0x4f8   : > { %v1705_v60 = vpop.f32.mrb[40].mxu1 }
 0x4f9   : > { %v2238_v61 = vpop.f32.mrb[41].mxu1 }
 0x4fa   : > { %v1708_v62 = vpop.f32.mrb[42].mxu1 }
 0x4fb   : > { %v2239_v63 = vpop.f32.mrb[43].mxu1 }
 0x4fc   : > { %v1659_v0 = vpop.f32.mrb[40].mxu0 }
 0x4fd   : > { %v1706_v2 = vadd.f32 %v1705_v60, %v1659_v0  ;;  %v2232_v3 = vpop.f32.mrb[41].mxu0 }
 0x4fe   : > { %v1662_v1 = vpop.f32.mrb[42].mxu0 }
 0x4ff   : > { %v2233_v4 = vpop.f32.mrb[43].mxu0 }
 0x504   : > { %v1754_v5 = vpop.f32.mrb[44].mxu0  ;;  %v1804_v6 = vpop.f32.mrb[44].mxu1 }
 0x505   : > { %v1760_v7 = vadd.f32 %v1754_v5, %v1706_v2  ;;  %v2244_v8 = vpop.f32.mrb[45].mxu0  ;;  %v2250_v9 = vpop.f32.mrb[45].mxu1 }
 0x506   : > { %v1757_v11 = vpop.f32.mrb[46].mxu0  ;;  %v1807_v12 = vpop.f32.mrb[46].mxu1 }
 0x507   : > { %v1810_v13 = vadd.f32 %v1804_v6, %v1760_v7  ;;  %v2245_v14 = vpop.f32.mrb[47].mxu0  ;;  %v2251_v15 = vpop.f32.mrb[47].mxu1 }
 0x509   : > { %v1818_v16 = vadd.f32 %v2019_v10, %v1810_v13 }
 0x50b   : > { %1819 = vst.msk [vmem:[%s319_s20] sm:$0xff] %vm356_vm1, %v1818_v16 }
 0x50c   : > { %2374 = shalt.err (!%p2371_p5)
}
 0x50d   : > { %s2375_s15 = scalar_lea.hbm %s2833_s23, 128  ;;  %s2379_s19 = scalar_lea.hbm %s2888_s7, 256 }
 0x50e   : > { %p2376_p6 = scmp.ne.s32.totalorder %s2833_s23, %s2375_s15  ;;  %p2380_p10 = scmp.lt.u32.totalorder %s2833_s23, %s2888_s7 }
 0x50f   : > { %p2381_p11 = scmp.lt.u32.totalorder %s2379_s19, %s2375_s15  ;;  %p2383_p13 = scmp.lt.u32.totalorder %s2375_s15, %s2833_s23 }
 0x510   : > { %p2377_p7 = pnand %p2376_p6, %p2526_p4 }
 0x511   : > { %p2382_p12 = por %p2381_p11, %p2380_p10 }
 0x512   : > { %p2378_p9 = pneg %p2377_p7 }
 0x513   : > { %p2384_p0 = por %p2383_p13, %p2382_p12 }
 0x515   : > { %p2385_p1 = pnand %p2384_p0, %p2378_p9 }
 0x517   : > { %2388 = shalt.err (!%p2385_p1)
}
 0x518   : > { %2252 = dma.vmem_to_hbm [thread:$0]  (%p2526_p4), %s2835_s21, 128, %s2833_s23, %s1821_s8  }
 0x519 PF: > { %p2258_p2 = scmp.ge.s32.totalorder %s2439_s29, 2  ;;  %s1847_s22 = sand.u32 1, %s2419_s24  }
 0x51a   : > { %s1848_s27 = scalar_lea.sflag [#allocation7], %s1847_s22 }
 0x51b   : > { %p2255_p3 = pnand %p2258_p2, %p2533_p8 }
 0x51d   : > { %2414 = dma.done.wait (!%p2255_p3), %s1848_s27, 128  }
 0x51e   : > { %2416 = vsyncadd (!%p2255_p3), %s1848_s27, 4294967168  ;;  %s20_s29 = sadd.s32 1, %s2439_s29   ;;  %s2891_s24 = smov %s2423_s25 }
 0x51f   : > { %p17_p5 = scmp.ge.s32.totalorder %s20_s29, 4   ;;  %s2892_s25 = smov %s2427_s26 }
 0x520   : > { %s2893_s26 = smov %s2539_s14  ;;  %s2894_s27 = smov %s2435_s28 }
 0x521   : > { %s2895_s28 = smov %s2897_s9  ;;  %19 = sbr.rel (!%p17_p5) target bundleno = 4 (0x4), region = 109 }
 0x528   :  { %1853 = vsyncpa [#allocation7], 1 }
 0x529   :  { %1855 = vsyncpa [#allocation7 + $0x1], 1 }

</bundles_post_ra>
